<compile_context>
chip_gen: v5e
topology: v5e:2x2
jax: 0.10.0
libtpu: 0.0.40
codegen_flags: <defaults>
</compile_context>

<pallas_src>
import functools

import jax
import jax.numpy as jnp
from jax.experimental import pallas as pl
from jax.experimental.pallas import tpu as pltpu


# ----------------------------- kernel helpers --------------------------------

def _layernorm(x, gamma, beta, eps=1e-5):
    mu = jnp.mean(x, axis=-1, keepdims=True)
    var = jnp.mean((x - mu) ** 2, axis=-1, keepdims=True)
    return (x - mu) * jax.lax.rsqrt(var + eps) * gamma + beta


# ----------------------------- fused encoder-stack kernel --------------------

def encoder_stack_kernel(bias_ref, x_ref,
                         wqkv_ref, bqkv_ref, wo_ref, bo_ref,
                         g1_ref, be1_ref,
                         w1_ref, b1_ref, w2_ref, b2_ref,
                         g2_ref, be2_ref,
                         gf_ref, bf_ref,
                         o_ref,
                         x_vmem,
                         *, num_heads, batch, seq_len):
    layer = pl.program_id(0)
    n_layers = pl.num_programs(0)

    # Load the activation once; it stays resident in VMEM across all layers.
    @pl.when(layer == 0)
    def _():
        x_vmem[...] = x_ref[...].astype(jnp.float32)

    x = x_vmem[...]                                  # (B*L, D) f32
    BL, D = x.shape
    B, L, H = batch, seq_len, num_heads
    dh = D // H
    scale = 1.0 / (dh ** 0.5)

    # ---- fused QKV projection: one wide bf16 MXU matmul, M = B*L ------------
    qkv = jnp.dot(x.astype(jnp.bfloat16), wqkv_ref[0],
                  preferred_element_type=jnp.float32) + bqkv_ref[0]   # (B*L, 3D) f32
    # Split the leading dim back into (B, L); L is a multiple of 8 so this is
    # layout-compatible (no lane-axis relayout).
    qkv3 = qkv.reshape(B, L, 3 * D)

    bias = bias_ref[...]                             # (B, 1, L) f32, -1e9 on padded keys

    # ---- attention: per-head value slices, batched einsums, no scratch ------
    ctx_heads = []
    for h in range(H):                               # static unroll over heads
        qh = qkv3[:, :, h * dh:(h + 1) * dh].astype(jnp.bfloat16)
        kh = qkv3[:, :, D + h * dh:D + (h + 1) * dh].astype(jnp.bfloat16)
        vh = qkv3[:, :, 2 * D + h * dh:2 * D + (h + 1) * dh].astype(jnp.bfloat16)

        s = jnp.einsum('bqd,bkd->bqk', qh, kh,
                       preferred_element_type=jnp.float32) * scale + bias  # (B, L, L) f32
        m = jnp.max(s, axis=-1, keepdims=True)
        p = jnp.exp(s - m)
        p = p * (1.0 / jnp.sum(p, axis=-1, keepdims=True))   # exact; denom is (B, L, 1)

        ctx_heads.append(jnp.einsum('bqk,bkd->bqd', p.astype(jnp.bfloat16), vh,
                                    preferred_element_type=jnp.float32))   # (B, L, dh)

    ctx = jnp.concatenate(ctx_heads, axis=-1).reshape(BL, D)   # (B*L, D) f32

    attn = jnp.dot(ctx.astype(jnp.bfloat16), wo_ref[0],
                   preferred_element_type=jnp.float32) + bo_ref[0]

    # ---- Add & Norm 1 (f32) ---------------------------------------------------
    x1 = _layernorm(x + attn, g1_ref[0], be1_ref[0])

    # ---- FFN: Linear -> ReLU -> Linear (bf16 operands, f32 accumulate) -------
    h1 = jnp.dot(x1.astype(jnp.bfloat16), w1_ref[0],
                 preferred_element_type=jnp.float32) + b1_ref[0]
    h1 = jnp.maximum(h1, 0.0)
    ffn = jnp.dot(h1.astype(jnp.bfloat16), w2_ref[0],
                  preferred_element_type=jnp.float32) + b2_ref[0]

    # ---- Add & Norm 2 (f32) ---------------------------------------------------
    x2 = _layernorm(x1 + ffn, g2_ref[0], be2_ref[0])
    x_vmem[...] = x2                                 # stays resident for next layer

    # Final LayerNorm folded into the last layer; single HBM writeback.
    @pl.when(layer == n_layers - 1)
    def _():
        o_ref[...] = _layernorm(x2, gf_ref[...], bf_ref[...]).astype(o_ref.dtype)


# ----------------------------- parameter preparation -------------------------

def prepare_params(layer_params, final_g, final_b):
    """Hoisted out of the forward path: stack per-layer weights along a leading
    layer axis, fuse Q/K/V, and pre-cast matmul weights to bf16 (MXU-native on
    v5e/v6e/v7x, halves weight HBM bytes and VMEM double-buffer footprint)."""
    def stack(name, dtype=jnp.float32):
        return jnp.stack([p[name] for p in layer_params], axis=0).astype(dtype)

    wqkv = jnp.stack([jnp.concatenate([p['wq'], p['wk'], p['wv']], axis=1)
                      for p in layer_params], axis=0).astype(jnp.bfloat16)   # (nl, D, 3D)
    bqkv = jnp.stack([jnp.concatenate([p['bq'], p['bk'], p['bv']], axis=1)
                      for p in layer_params], axis=0)                        # (nl, 1, 3D) f32
    return dict(
        wqkv=wqkv, bqkv=bqkv,
        wo=stack('wo', jnp.bfloat16), bo=stack('bo'),
        g1=stack('g1'), be1=stack('be1'),
        w1=stack('w1', jnp.bfloat16), b1=stack('b1'),
        w2=stack('w2', jnp.bfloat16), b2=stack('b2'),
        g2=stack('g2'), be2=stack('be2'),
        gf=final_g, bf=final_b,
    )


# ----------------------------- wrapper ----------------------------------------

def encoder_forward(x, mask, params, num_heads):
    """x: (B, L, D) f32; mask: bool (B, L), True = padded key (torch semantics)."""
    B, L, D = x.shape
    nl, _, F = params['w1'].shape
    H = num_heads

    # Key-padding bias, precomputed once (assumes >= 1 valid key per row).
    if mask is None:
        bias = jnp.zeros((B, 1, L), jnp.float32)
    else:
        bias = mask.astype(jnp.float32)[:, None, :] * (-1e9)        # (B, 1, L)

    x_flat = x.reshape(B * L, D)

    # Advisory cost estimate (weights streamed once per layer, batch fused).
    flops = nl * B * L * (2 * D * 3 * D + 4 * L * D + 2 * D * D + 4 * D * F) \
        + 10 * B * L * D
    transcendentals = nl * H * B * L * L + 3 * B * L * (2 * nl + 1)
    bytes_accessed = (2 * nl * (3 * D * D + D * D + 2 * D * F)      # bf16 weights, once
                      + 4 * nl * (3 * D + 6 * D + F)                # f32 biases / LN params
                      + 4 * (2 * B * L * D + B * L) + 8 * D)
    cost = pl.CostEstimate(flops=int(flops),
                           transcendentals=int(transcendentals),
                           bytes_accessed=int(bytes_accessed))

    kernel = functools.partial(encoder_stack_kernel,
                               num_heads=H, batch=B, seq_len=L)

    out = pl.pallas_call(
        kernel,
        out_shape=jax.ShapeDtypeStruct((B * L, D), x.dtype),
        grid=(nl,),
        in_specs=[
            pl.BlockSpec((B, 1, L), lambda l: (0, 0, 0)),            # key-padding bias
            pl.BlockSpec((B * L, D), lambda l: (0, 0)),              # x (flat)
            pl.BlockSpec((1, D, 3 * D), lambda l: (l, 0, 0)),        # wqkv (bf16)
            pl.BlockSpec((1, 1, 3 * D), lambda l: (l, 0, 0)),        # bqkv
            pl.BlockSpec((1, D, D), lambda l: (l, 0, 0)),            # wo (bf16)
            pl.BlockSpec((1, 1, D), lambda l: (l, 0, 0)),            # bo
            pl.BlockSpec((1, 1, D), lambda l: (l, 0, 0)),            # ln1 gamma
            pl.BlockSpec((1, 1, D), lambda l: (l, 0, 0)),            # ln1 beta
            pl.BlockSpec((1, D, F), lambda l: (l, 0, 0)),            # w1 (bf16)
            pl.BlockSpec((1, 1, F), lambda l: (l, 0, 0)),            # b1
            pl.BlockSpec((1, F, D), lambda l: (l, 0, 0)),            # w2 (bf16)
            pl.BlockSpec((1, 1, D), lambda l: (l, 0, 0)),            # b2
            pl.BlockSpec((1, 1, D), lambda l: (l, 0, 0)),            # ln2 gamma
            pl.BlockSpec((1, 1, D), lambda l: (l, 0, 0)),            # ln2 beta
            pl.BlockSpec((1, D), lambda l: (0, 0)),                  # final gamma
            pl.BlockSpec((1, D), lambda l: (0, 0)),                  # final beta
        ],
        out_specs=pl.BlockSpec((B * L, D), lambda l: (0, 0)),
        scratch_shapes=[
            pltpu.VMEM((B * L, D), jnp.float32),   # resident activation
        ],
        compiler_params=pltpu.CompilerParams(
            dimension_semantics=("arbitrary",),    # layer axis is sequential
            vmem_limit_bytes=48 * 1024 * 1024),    # <= v7x 64 MiB; > v5e 16 MiB default
        cost_estimate=cost,
    )(bias, x_flat,
      params['wqkv'], params['bqkv'], params['wo'], params['bo'],
      params['g1'], params['be1'],
      params['w1'], params['b1'], params['w2'], params['b2'],
      params['g2'], params['be2'],
      params['gf'], params['bf'])

    return out.reshape(B, L, D)


# ----------------------------- parameters -------------------------------------

def init_params(key, num_layers, D, F):
    layer_params = []
    for _ in range(num_layers):
        key, *ks = jax.random.split(key, 9)
        layer_params.append(dict(
            wq=jax.random.normal(ks[0], (D, D), jnp.float32) * 0.05,
            wk=jax.random.normal(ks[1], (D, D), jnp.float32) * 0.05,
            wv=jax.random.normal(ks[2], (D, D), jnp.float32) * 0.05,
            wo=jax.random.normal(ks[3], (D, D), jnp.float32) * 0.05,
            bq=jax.random.normal(ks[4], (1, D), jnp.float32) * 0.01,
            bk=jax.random.normal(ks[5], (1, D), jnp.float32) * 0.01,
            bv=jax.random.normal(ks[6], (1, D), jnp.float32) * 0.01,
            bo=jnp.zeros((1, D), jnp.float32),
            g1=jnp.ones((1, D), jnp.float32),
            be1=jnp.zeros((1, D), jnp.float32),
            w1=jax.random.normal(ks[7], (D, F), jnp.float32) * 0.05,
            b1=jnp.zeros((1, F), jnp.float32),
            w2=jax.random.normal(jax.random.fold_in(key, 7), (F, D), jnp.float32) * 0.05,
            b2=jnp.zeros((1, D), jnp.float32),
            g2=jnp.ones((1, D), jnp.float32),
            be2=jnp.zeros((1, D), jnp.float32),
        ))
    final_g = jnp.ones((1, D), jnp.float32)
    final_b = jnp.zeros((1, D), jnp.float32)
    return layer_params, final_g, final_b


# ----------------------------- pure-JAX reference ------------------------------

def ref_encoder(x, mask, layer_params, final_g, final_b, num_heads):
    def ln(x, g, b, eps=1e-5):
        mu = x.mean(-1, keepdims=True)
        var = ((x - mu) ** 2).mean(-1, keepdims=True)
        return (x - mu) / jnp.sqrt(var + eps) * g + b

    B, L, D = x.shape
    H = num_heads
    dh = D // H
    bias = mask.astype(jnp.float32) * (-1e9)                        # (B, L)
    for p in layer_params:
        q = x @ p['wq'] + p['bq']
        k = x @ p['wk'] + p['bk']
        v = x @ p['wv'] + p['bv']
        qh = q.reshape(B, L, H, dh).transpose(0, 2, 1, 3)
        kh = k.reshape(B, L, H, dh).transpose(0, 2, 1, 3)
        vh = v.reshape(B, L, H, dh).transpose(0, 2, 1, 3)
        s = jnp.einsum('bhqd,bhkd->bhqk', qh, kh) / jnp.sqrt(dh)
        s = s + bias[:, None, None, :]
        a = jax.nn.softmax(s, axis=-1)
        ctx = jnp.einsum('bhqk,bhkd->bhqd', a, vh).transpose(0, 2, 1, 3).reshape(B, L, D)
        attn = ctx @ p['wo'] + p['bo']
        x = ln(x + attn, p['g1'], p['be1'])
        h1 = jax.nn.relu(x @ p['w1'] + p['b1'])
        ffn = h1 @ p['w2'] + p['b2']
        x = ln(x + ffn, p['g2'], p['be2'])
    return ln(x, final_g, final_b)


# ----------------------------- main --------------------------------------------

if __name__ == "__main__":
    num_layers, D, H, F = 2, 32, 4, 64
    B, L = 2, 8

    key = jax.random.PRNGKey(0)
    kx, kp = jax.random.split(key)
    x = jax.random.normal(kx, (B, L, D), jnp.float32)

    # key_padding_mask: True = padded (torch semantics). Batch 1 has 3 padded keys.
    mask = jnp.zeros((B, L), dtype=bool).at[1, L - 3:].set(True)

    layer_params, final_g, final_b = init_params(kp, num_layers, D, F)
    params = prepare_params(layer_params, final_g, final_b)   # once, outside jit

    fwd = jax.jit(functools.partial(encoder_forward, num_heads=H))
    out = fwd(x, mask, params)
    out = jax.block_until_ready(out)

    ref = ref_encoder(x, mask, layer_params, final_g, final_b, H)
    assert out.shape == (B, L, D)
    # Tolerance 3e-2: matmul operands are bf16 (MXU-native) with f32 accumulation;
    # softmax, mask bias, residuals and LayerNorm statistics are exact f32.
    assert jnp.allclose(out, ref, atol=3e-2, rtol=3e-2), "mismatch vs JAX reference"

    print("KERNEL_OK")
</pallas_src>

<mosaic_0001>
module attributes {stable_mosaic.version = 11 : i64} {
  func.func @encoder_stack_kernel(%arg0: i32, %arg1: memref<2x1x8xf32, #tpu.memory_space<vmem>>, %arg2: memref<16x32xf32, #tpu.memory_space<vmem>>, %arg3: memref<1x32x96xbf16, #tpu.memory_space<vmem>>, %arg4: memref<1x1x96xf32, #tpu.memory_space<vmem>>, %arg5: memref<1x32x32xbf16, #tpu.memory_space<vmem>>, %arg6: memref<1x1x32xf32, #tpu.memory_space<vmem>>, %arg7: memref<1x1x32xf32, #tpu.memory_space<vmem>>, %arg8: memref<1x1x32xf32, #tpu.memory_space<vmem>>, %arg9: memref<1x32x64xbf16, #tpu.memory_space<vmem>>, %arg10: memref<1x1x64xf32, #tpu.memory_space<vmem>>, %arg11: memref<1x64x32xbf16, #tpu.memory_space<vmem>>, %arg12: memref<1x1x32xf32, #tpu.memory_space<vmem>>, %arg13: memref<1x1x32xf32, #tpu.memory_space<vmem>>, %arg14: memref<1x1x32xf32, #tpu.memory_space<vmem>>, %arg15: memref<1x32xf32, #tpu.memory_space<vmem>>, %arg16: memref<1x32xf32, #tpu.memory_space<vmem>>, %arg17: memref<16x32xf32, #tpu.memory_space<vmem>>, %arg18: memref<16x32xf32, #tpu.memory_space<vmem>>) attributes {dimension_semantics = [#tpu.dimension_semantics<arbitrary>], iteration_bounds = array<i64: 2>, scalar_prefetch = 0 : i64, scratch_operands = 1 : i64, tpu.core_type = #tpu.core_type<tc>, window_params = [{pipeline_mode = #tpu.pipeline_mode<synchronous>, transform_indices = @transform_0, window_bounds = array<i64: 2, 1, 8>}, {pipeline_mode = #tpu.pipeline_mode<synchronous>, transform_indices = @transform_1, window_bounds = array<i64: 16, 32>}, {transform_indices = @transform_2, window_bounds = array<i64: 1, 32, 96>}, {transform_indices = @transform_3, window_bounds = array<i64: 1, 1, 96>}, {transform_indices = @transform_4, window_bounds = array<i64: 1, 32, 32>}, {transform_indices = @transform_5, window_bounds = array<i64: 1, 1, 32>}, {transform_indices = @transform_6, window_bounds = array<i64: 1, 1, 32>}, {transform_indices = @transform_7, window_bounds = array<i64: 1, 1, 32>}, {transform_indices = @transform_8, window_bounds = array<i64: 1, 32, 64>}, {transform_indices = @transform_9, window_bounds = array<i64: 1, 1, 64>}, {transform_indices = @transform_10, window_bounds = array<i64: 1, 64, 32>}, {transform_indices = @transform_11, window_bounds = array<i64: 1, 1, 32>}, {transform_indices = @transform_12, window_bounds = array<i64: 1, 1, 32>}, {transform_indices = @transform_13, window_bounds = array<i64: 1, 1, 32>}, {pipeline_mode = #tpu.pipeline_mode<synchronous>, transform_indices = @transform_14, window_bounds = array<i64: 1, 32>}, {pipeline_mode = #tpu.pipeline_mode<synchronous>, transform_indices = @transform_15, window_bounds = array<i64: 1, 32>}, {pipeline_mode = #tpu.pipeline_mode<synchronous>, transform_indices = @transform_16, window_bounds = array<i64: 16, 32>}]} {
    %c0_i32 = arith.constant 0 : i32
    %0 = arith.cmpi eq, %arg0, %c0_i32 : i32
    %1 = arith.extui %0 : i1 to i32
    %c0_i32_0 = arith.constant 0 : i32
    %2 = arith.cmpi ne, %1, %c0_i32_0 : i32
    scf.if %2 {
      %c0_82 = arith.constant 0 : index
      %c0_83 = arith.constant 0 : index
      %196 = vector.load %arg2[%c0_82, %c0_83] : memref<16x32xf32, #tpu.memory_space<vmem>>, vector<16x32xf32>
      %c0_84 = arith.constant 0 : index
      %c0_85 = arith.constant 0 : index
      %197 = vector.load %arg18[%c0_84, %c0_85] : memref<16x32xf32, #tpu.memory_space<vmem>>, vector<16x32xf32>
      tpu.vector_store %arg18[%c0_84, %c0_85], %196 {strides = array<i32>} : memref<16x32xf32, #tpu.memory_space<vmem>>, vector<16x32xf32>,
    } else {
    }
    %c0 = arith.constant 0 : index
    %c0_1 = arith.constant 0 : index
    %3 = vector.load %arg18[%c0, %c0_1] : memref<16x32xf32, #tpu.memory_space<vmem>>, vector<16x32xf32>
    %4 = arith.truncf %3 : vector<16x32xf32> to vector<16x32xbf16>
    %c0_2 = arith.constant 0 : index
    %c0_3 = arith.constant 0 : index
    %c0_4 = arith.constant 0 : index
    %5 = vector.load %arg3[%c0_2, %c0_3, %c0_4] : memref<1x32x96xbf16, #tpu.memory_space<vmem>>, vector<1x32x96xbf16>
    %6 = vector.shape_cast %5 : vector<1x32x96xbf16> to vector<32x96xbf16>
    %cst = arith.constant dense<0.000000e+00> : vector<16x96xf32>
    %7 = tpu.matmul %4, %6, %cst {dimension_numbers = #tpu.dot_dimension_numbers<[1], [0], [0], [1], [0, 0, 1, 1], [], []>} : vector<16x32xbf16>, vector<32x96xbf16>, vector<16x96xf32> -> vector<16x96xf32>
    %c0_5 = arith.constant 0 : index
    %c0_6 = arith.constant 0 : index
    %c0_7 = arith.constant 0 : index
    %8 = vector.load %arg4[%c0_5, %c0_6, %c0_7] : memref<1x1x96xf32, #tpu.memory_space<vmem>>, vector<1x1x96xf32>
    %9 = vector.shape_cast %8 : vector<1x1x96xf32> to vector<1x96xf32>
    %10 = vector.broadcast %9 : vector<1x96xf32> to vector<16x96xf32>
    %11 = arith.addf %7, %10 : vector<16x96xf32>
    %12 = vector.shape_cast %11 : vector<16x96xf32> to vector<2x8x96xf32>
    %c0_8 = arith.constant 0 : index
    %c0_9 = arith.constant 0 : index
    %c0_10 = arith.constant 0 : index
    %13 = vector.load %arg1[%c0_8, %c0_9, %c0_10] : memref<2x1x8xf32, #tpu.memory_space<vmem>>, vector<2x1x8xf32>
    %14 = vector.extract_strided_slice %12 {offsets = [0, 0, 0], sizes = [2, 8, 8], strides = [1, 1, 1]} : vector<2x8x96xf32> to vector<2x8x8xf32>
    %15 = arith.truncf %14 : vector<2x8x8xf32> to vector<2x8x8xbf16>
    %16 = vector.extract_strided_slice %12 {offsets = [0, 0, 32], sizes = [2, 8, 8], strides = [1, 1, 1]} : vector<2x8x96xf32> to vector<2x8x8xf32>
    %17 = arith.truncf %16 : vector<2x8x8xf32> to vector<2x8x8xbf16>
    %18 = vector.extract_strided_slice %12 {offsets = [0, 0, 64], sizes = [2, 8, 8], strides = [1, 1, 1]} : vector<2x8x96xf32> to vector<2x8x8xf32>
    %19 = arith.truncf %18 : vector<2x8x8xf32> to vector<2x8x8xbf16>
    "tpu.trace_start"() <{level = 10 : i32, message = "bqd,bkd->bqk"}> : () -> ()
    %cst_11 = arith.constant dense<0.000000e+00> : vector<2x8x8xf32>
    %20 = tpu.matmul %15, %17, %cst_11 {dimension_numbers = #tpu.dot_dimension_numbers<[2], [2], [1], [1], [0, 0, 0, 1, 1, 1], [0], [0]>} : vector<2x8x8xbf16>, vector<2x8x8xbf16>, vector<2x8x8xf32> -> vector<2x8x8xf32>
    "tpu.trace_stop"() : () -> ()
    %cst_12 = arith.constant 0.353553385 : f32
    %21 = vector.broadcast %cst_12 : f32 to vector<2x8x8xf32>
    %22 = arith.mulf %20, %21 : vector<2x8x8xf32>
    %23 = vector.broadcast %13 : vector<2x1x8xf32> to vector<2x8x8xf32>
    %24 = arith.addf %22, %23 : vector<2x8x8xf32>
    %cst_13 = arith.constant dense<0xFF800000> : vector<2x8xf32>
    %25 = vector.multi_reduction <maximumf>, %24, %cst_13 [2] : vector<2x8x8xf32> to vector<2x8xf32>
    %26 = vector.shape_cast %25 : vector<2x8xf32> to vector<2x8x1xf32>
    %27 = vector.broadcast %26 : vector<2x8x1xf32> to vector<2x8x8xf32>
    %28 = arith.subf %24, %27 : vector<2x8x8xf32>
    %29 = math.exp %28 : vector<2x8x8xf32>
    %cst_14 = arith.constant dense<0.000000e+00> : vector<2x8xf32>
    %30 = vector.multi_reduction <add>, %29, %cst_14 [2] : vector<2x8x8xf32> to vector<2x8xf32>
    %31 = vector.shape_cast %30 : vector<2x8xf32> to vector<2x8x1xf32>
    %cst_15 = arith.constant 1.000000e+00 : f32
    %32 = vector.broadcast %cst_15 : f32 to vector<2x8x1xf32>
    %33 = arith.divf %32, %31 : vector<2x8x1xf32>
    %34 = vector.broadcast %33 : vector<2x8x1xf32> to vector<2x8x8xf32>
    %35 = arith.mulf %29, %34 : vector<2x8x8xf32>
    %36 = arith.truncf %35 : vector<2x8x8xf32> to vector<2x8x8xbf16>
    "tpu.trace_start"() <{level = 10 : i32, message = "bqk,bkd->bqd"}> : () -> ()
    %cst_16 = arith.constant dense<0.000000e+00> : vector<2x8x8xf32>
    %37 = tpu.matmul %36, %19, %cst_16 {dimension_numbers = #tpu.dot_dimension_numbers<[2], [1], [1], [2], [0, 0, 0, 1, 1, 2], [0], [0]>} : vector<2x8x8xbf16>, vector<2x8x8xbf16>, vector<2x8x8xf32> -> vector<2x8x8xf32>
    "tpu.trace_stop"() : () -> ()
    %38 = vector.extract_strided_slice %12 {offsets = [0, 0, 8], sizes = [2, 8, 8], strides = [1, 1, 1]} : vector<2x8x96xf32> to vector<2x8x8xf32>
    %39 = arith.truncf %38 : vector<2x8x8xf32> to vector<2x8x8xbf16>
    %40 = vector.extract_strided_slice %12 {offsets = [0, 0, 40], sizes = [2, 8, 8], strides = [1, 1, 1]} : vector<2x8x96xf32> to vector<2x8x8xf32>
    %41 = arith.truncf %40 : vector<2x8x8xf32> to vector<2x8x8xbf16>
    %42 = vector.extract_strided_slice %12 {offsets = [0, 0, 72], sizes = [2, 8, 8], strides = [1, 1, 1]} : vector<2x8x96xf32> to vector<2x8x8xf32>
    %43 = arith.truncf %42 : vector<2x8x8xf32> to vector<2x8x8xbf16>
    "tpu.trace_start"() <{level = 10 : i32, message = "bqd,bkd->bqk"}> : () -> ()
    %cst_17 = arith.constant dense<0.000000e+00> : vector<2x8x8xf32>
    %44 = tpu.matmul %39, %41, %cst_17 {dimension_numbers = #tpu.dot_dimension_numbers<[2], [2], [1], [1], [0, 0, 0, 1, 1, 1], [0], [0]>} : vector<2x8x8xbf16>, vector<2x8x8xbf16>, vector<2x8x8xf32> -> vector<2x8x8xf32>
    "tpu.trace_stop"() : () -> ()
    %cst_18 = arith.constant 0.353553385 : f32
    %45 = vector.broadcast %cst_18 : f32 to vector<2x8x8xf32>
    %46 = arith.mulf %44, %45 : vector<2x8x8xf32>
    %47 = vector.broadcast %13 : vector<2x1x8xf32> to vector<2x8x8xf32>
    %48 = arith.addf %46, %47 : vector<2x8x8xf32>
    %cst_19 = arith.constant dense<0xFF800000> : vector<2x8xf32>
    %49 = vector.multi_reduction <maximumf>, %48, %cst_19 [2] : vector<2x8x8xf32> to vector<2x8xf32>
    %50 = vector.shape_cast %49 : vector<2x8xf32> to vector<2x8x1xf32>
    %51 = vector.broadcast %50 : vector<2x8x1xf32> to vector<2x8x8xf32>
    %52 = arith.subf %48, %51 : vector<2x8x8xf32>
    %53 = math.exp %52 : vector<2x8x8xf32>
    %cst_20 = arith.constant dense<0.000000e+00> : vector<2x8xf32>
    %54 = vector.multi_reduction <add>, %53, %cst_20 [2] : vector<2x8x8xf32> to vector<2x8xf32>
    %55 = vector.shape_cast %54 : vector<2x8xf32> to vector<2x8x1xf32>
    %cst_21 = arith.constant 1.000000e+00 : f32
    %56 = vector.broadcast %cst_21 : f32 to vector<2x8x1xf32>
    %57 = arith.divf %56, %55 : vector<2x8x1xf32>
    %58 = vector.broadcast %57 : vector<2x8x1xf32> to vector<2x8x8xf32>
    %59 = arith.mulf %53, %58 : vector<2x8x8xf32>
    %60 = arith.truncf %59 : vector<2x8x8xf32> to vector<2x8x8xbf16>
    "tpu.trace_start"() <{level = 10 : i32, message = "bqk,bkd->bqd"}> : () -> ()
    %cst_22 = arith.constant dense<0.000000e+00> : vector<2x8x8xf32>
    %61 = tpu.matmul %60, %43, %cst_22 {dimension_numbers = #tpu.dot_dimension_numbers<[2], [1], [1], [2], [0, 0, 0, 1, 1, 2], [0], [0]>} : vector<2x8x8xbf16>, vector<2x8x8xbf16>, vector<2x8x8xf32> -> vector<2x8x8xf32>
    "tpu.trace_stop"() : () -> ()
    %62 = vector.extract_strided_slice %12 {offsets = [0, 0, 16], sizes = [2, 8, 8], strides = [1, 1, 1]} : vector<2x8x96xf32> to vector<2x8x8xf32>
    %63 = arith.truncf %62 : vector<2x8x8xf32> to vector<2x8x8xbf16>
    %64 = vector.extract_strided_slice %12 {offsets = [0, 0, 48], sizes = [2, 8, 8], strides = [1, 1, 1]} : vector<2x8x96xf32> to vector<2x8x8xf32>
    %65 = arith.truncf %64 : vector<2x8x8xf32> to vector<2x8x8xbf16>
    %66 = vector.extract_strided_slice %12 {offsets = [0, 0, 80], sizes = [2, 8, 8], strides = [1, 1, 1]} : vector<2x8x96xf32> to vector<2x8x8xf32>
    %67 = arith.truncf %66 : vector<2x8x8xf32> to vector<2x8x8xbf16>
    "tpu.trace_start"() <{level = 10 : i32, message = "bqd,bkd->bqk"}> : () -> ()
    %cst_23 = arith.constant dense<0.000000e+00> : vector<2x8x8xf32>
    %68 = tpu.matmul %63, %65, %cst_23 {dimension_numbers = #tpu.dot_dimension_numbers<[2], [2], [1], [1], [0, 0, 0, 1, 1, 1], [0], [0]>} : vector<2x8x8xbf16>, vector<2x8x8xbf16>, vector<2x8x8xf32> -> vector<2x8x8xf32>
    "tpu.trace_stop"() : () -> ()
    %cst_24 = arith.constant 0.353553385 : f32
    %69 = vector.broadcast %cst_24 : f32 to vector<2x8x8xf32>
    %70 = arith.mulf %68, %69 : vector<2x8x8xf32>
    %71 = vector.broadcast %13 : vector<2x1x8xf32> to vector<2x8x8xf32>
    %72 = arith.addf %70, %71 : vector<2x8x8xf32>
    %cst_25 = arith.constant dense<0xFF800000> : vector<2x8xf32>
    %73 = vector.multi_reduction <maximumf>, %72, %cst_25 [2] : vector<2x8x8xf32> to vector<2x8xf32>
    %74 = vector.shape_cast %73 : vector<2x8xf32> to vector<2x8x1xf32>
    %75 = vector.broadcast %74 : vector<2x8x1xf32> to vector<2x8x8xf32>
    %76 = arith.subf %72, %75 : vector<2x8x8xf32>
    %77 = math.exp %76 : vector<2x8x8xf32>
    %cst_26 = arith.constant dense<0.000000e+00> : vector<2x8xf32>
    %78 = vector.multi_reduction <add>, %77, %cst_26 [2] : vector<2x8x8xf32> to vector<2x8xf32>
    %79 = vector.shape_cast %78 : vector<2x8xf32> to vector<2x8x1xf32>
    %cst_27 = arith.constant 1.000000e+00 : f32
    %80 = vector.broadcast %cst_27 : f32 to vector<2x8x1xf32>
    %81 = arith.divf %80, %79 : vector<2x8x1xf32>
    %82 = vector.broadcast %81 : vector<2x8x1xf32> to vector<2x8x8xf32>
    %83 = arith.mulf %77, %82 : vector<2x8x8xf32>
    %84 = arith.truncf %83 : vector<2x8x8xf32> to vector<2x8x8xbf16>
    "tpu.trace_start"() <{level = 10 : i32, message = "bqk,bkd->bqd"}> : () -> ()
    %cst_28 = arith.constant dense<0.000000e+00> : vector<2x8x8xf32>
    %85 = tpu.matmul %84, %67, %cst_28 {dimension_numbers = #tpu.dot_dimension_numbers<[2], [1], [1], [2], [0, 0, 0, 1, 1, 2], [0], [0]>} : vector<2x8x8xbf16>, vector<2x8x8xbf16>, vector<2x8x8xf32> -> vector<2x8x8xf32>
    "tpu.trace_stop"() : () -> ()
    %86 = vector.extract_strided_slice %12 {offsets = [0, 0, 24], sizes = [2, 8, 8], strides = [1, 1, 1]} : vector<2x8x96xf32> to vector<2x8x8xf32>
    %87 = arith.truncf %86 : vector<2x8x8xf32> to vector<2x8x8xbf16>
    %88 = vector.extract_strided_slice %12 {offsets = [0, 0, 56], sizes = [2, 8, 8], strides = [1, 1, 1]} : vector<2x8x96xf32> to vector<2x8x8xf32>
    %89 = arith.truncf %88 : vector<2x8x8xf32> to vector<2x8x8xbf16>
    %90 = vector.extract_strided_slice %12 {offsets = [0, 0, 88], sizes = [2, 8, 8], strides = [1, 1, 1]} : vector<2x8x96xf32> to vector<2x8x8xf32>
    %91 = arith.truncf %90 : vector<2x8x8xf32> to vector<2x8x8xbf16>
    "tpu.trace_start"() <{level = 10 : i32, message = "bqd,bkd->bqk"}> : () -> ()
    %cst_29 = arith.constant dense<0.000000e+00> : vector<2x8x8xf32>
    %92 = tpu.matmul %87, %89, %cst_29 {dimension_numbers = #tpu.dot_dimension_numbers<[2], [2], [1], [1], [0, 0, 0, 1, 1, 1], [0], [0]>} : vector<2x8x8xbf16>, vector<2x8x8xbf16>, vector<2x8x8xf32> -> vector<2x8x8xf32>
    "tpu.trace_stop"() : () -> ()
    %cst_30 = arith.constant 0.353553385 : f32
    %93 = vector.broadcast %cst_30 : f32 to vector<2x8x8xf32>
    %94 = arith.mulf %92, %93 : vector<2x8x8xf32>
    %95 = vector.broadcast %13 : vector<2x1x8xf32> to vector<2x8x8xf32>
    %96 = arith.addf %94, %95 : vector<2x8x8xf32>
    %cst_31 = arith.constant dense<0xFF800000> : vector<2x8xf32>
    %97 = vector.multi_reduction <maximumf>, %96, %cst_31 [2] : vector<2x8x8xf32> to vector<2x8xf32>
    %98 = vector.shape_cast %97 : vector<2x8xf32> to vector<2x8x1xf32>
    %99 = vector.broadcast %98 : vector<2x8x1xf32> to vector<2x8x8xf32>
    %100 = arith.subf %96, %99 : vector<2x8x8xf32>
    %101 = math.exp %100 : vector<2x8x8xf32>
    %cst_32 = arith.constant dense<0.000000e+00> : vector<2x8xf32>
    %102 = vector.multi_reduction <add>, %101, %cst_32 [2] : vector<2x8x8xf32> to vector<2x8xf32>
    %103 = vector.shape_cast %102 : vector<2x8xf32> to vector<2x8x1xf32>
    %cst_33 = arith.constant 1.000000e+00 : f32
    %104 = vector.broadcast %cst_33 : f32 to vector<2x8x1xf32>
    %105 = arith.divf %104, %103 : vector<2x8x1xf32>
    %106 = vector.broadcast %105 : vector<2x8x1xf32> to vector<2x8x8xf32>
    %107 = arith.mulf %101, %106 : vector<2x8x8xf32>
    %108 = arith.truncf %107 : vector<2x8x8xf32> to vector<2x8x8xbf16>
    "tpu.trace_start"() <{level = 10 : i32, message = "bqk,bkd->bqd"}> : () -> ()
    %cst_34 = arith.constant dense<0.000000e+00> : vector<2x8x8xf32>
    %109 = tpu.matmul %108, %91, %cst_34 {dimension_numbers = #tpu.dot_dimension_numbers<[2], [1], [1], [2], [0, 0, 0, 1, 1, 2], [0], [0]>} : vector<2x8x8xbf16>, vector<2x8x8xbf16>, vector<2x8x8xf32> -> vector<2x8x8xf32>
    "tpu.trace_stop"() : () -> ()
    %110 = tpu.concatenate %37, %61, %85, %109 in 2 : vector<2x8x8xf32>, vector<2x8x8xf32>, vector<2x8x8xf32>, vector<2x8x8xf32> -> vector<2x8x32xf32>
    %111 = vector.shape_cast %110 : vector<2x8x32xf32> to vector<16x32xf32>
    %112 = arith.truncf %111 : vector<16x32xf32> to vector<16x32xbf16>
    %c0_35 = arith.constant 0 : index
    %c0_36 = arith.constant 0 : index
    %c0_37 = arith.constant 0 : index
    %113 = vector.load %arg5[%c0_35, %c0_36, %c0_37] : memref<1x32x32xbf16, #tpu.memory_space<vmem>>, vector<1x32x32xbf16>
    %114 = vector.shape_cast %113 : vector<1x32x32xbf16> to vector<32x32xbf16>
    %cst_38 = arith.constant dense<0.000000e+00> : vector<16x32xf32>
    %115 = tpu.matmul %112, %114, %cst_38 {dimension_numbers = #tpu.dot_dimension_numbers<[1], [0], [0], [1], [0, 0, 1, 1], [], []>} : vector<16x32xbf16>, vector<32x32xbf16>, vector<16x32xf32> -> vector<16x32xf32>
    %c0_39 = arith.constant 0 : index
    %c0_40 = arith.constant 0 : index
    %c0_41 = arith.constant 0 : index
    %116 = vector.load %arg6[%c0_39, %c0_40, %c0_41] : memref<1x1x32xf32, #tpu.memory_space<vmem>>, vector<1x1x32xf32>
    %117 = vector.shape_cast %116 : vector<1x1x32xf32> to vector<1x32xf32>
    %118 = vector.broadcast %117 : vector<1x32xf32> to vector<16x32xf32>
    %119 = arith.addf %115, %118 : vector<16x32xf32>
    %120 = arith.addf %3, %119 : vector<16x32xf32>
    %c0_42 = arith.constant 0 : index
    %c0_43 = arith.constant 0 : index
    %c0_44 = arith.constant 0 : index
    %121 = vector.load %arg7[%c0_42, %c0_43, %c0_44] : memref<1x1x32xf32, #tpu.memory_space<vmem>>, vector<1x1x32xf32>
    %122 = vector.shape_cast %121 : vector<1x1x32xf32> to vector<1x32xf32>
    %c0_45 = arith.constant 0 : index
    %c0_46 = arith.constant 0 : index
    %c0_47 = arith.constant 0 : index
    %123 = vector.load %arg8[%c0_45, %c0_46, %c0_47] : memref<1x1x32xf32, #tpu.memory_space<vmem>>, vector<1x1x32xf32>
    %124 = vector.shape_cast %123 : vector<1x1x32xf32> to vector<1x32xf32>
    %cst_48 = arith.constant dense<0.000000e+00> : vector<16xf32>
    %125 = vector.multi_reduction <add>, %120, %cst_48 [1] : vector<16x32xf32> to vector<16xf32>
    %126 = vector.shape_cast %125 : vector<16xf32> to vector<16x1xf32>
    %cst_49 = arith.constant 3.200000e+01 : f32
    %127 = vector.broadcast %cst_49 : f32 to vector<16x1xf32>
    %128 = arith.divf %126, %127 : vector<16x1xf32>
    %129 = vector.broadcast %128 : vector<16x1xf32> to vector<16x32xf32>
    %130 = arith.subf %120, %129 : vector<16x32xf32>
    %131 = arith.mulf %130, %130 : vector<16x32xf32>
    %cst_50 = arith.constant dense<0.000000e+00> : vector<16xf32>
    %132 = vector.multi_reduction <add>, %131, %cst_50 [1] : vector<16x32xf32> to vector<16xf32>
    %133 = vector.shape_cast %132 : vector<16xf32> to vector<16x1xf32>
    %cst_51 = arith.constant 3.200000e+01 : f32
    %134 = vector.broadcast %cst_51 : f32 to vector<16x1xf32>
    %135 = arith.divf %133, %134 : vector<16x1xf32>
    %136 = vector.broadcast %128 : vector<16x1xf32> to vector<16x32xf32>
    %137 = arith.subf %120, %136 : vector<16x32xf32>
    %cst_52 = arith.constant 9.99999974E-6 : f32
    %138 = vector.broadcast %cst_52 : f32 to vector<16x1xf32>
    %139 = arith.addf %135, %138 : vector<16x1xf32>
    %140 = math.rsqrt %139 : vector<16x1xf32>
    %141 = vector.broadcast %140 : vector<16x1xf32> to vector<16x32xf32>
    %142 = arith.mulf %137, %141 : vector<16x32xf32>
    %143 = vector.broadcast %122 : vector<1x32xf32> to vector<16x32xf32>
    %144 = arith.mulf %142, %143 : vector<16x32xf32>
    %145 = vector.broadcast %124 : vector<1x32xf32> to vector<16x32xf32>
    %146 = arith.addf %144, %145 : vector<16x32xf32>
    %147 = arith.truncf %146 : vector<16x32xf32> to vector<16x32xbf16>
    %c0_53 = arith.constant 0 : index
    %c0_54 = arith.constant 0 : index
    %c0_55 = arith.constant 0 : index
    %148 = vector.load %arg9[%c0_53, %c0_54, %c0_55] : memref<1x32x64xbf16, #tpu.memory_space<vmem>>, vector<1x32x64xbf16>
    %149 = vector.shape_cast %148 : vector<1x32x64xbf16> to vector<32x64xbf16>
    %cst_56 = arith.constant dense<0.000000e+00> : vector<16x64xf32>
    %150 = tpu.matmul %147, %149, %cst_56 {dimension_numbers = #tpu.dot_dimension_numbers<[1], [0], [0], [1], [0, 0, 1, 1], [], []>} : vector<16x32xbf16>, vector<32x64xbf16>, vector<16x64xf32> -> vector<16x64xf32>
    %c0_57 = arith.constant 0 : index
    %c0_58 = arith.constant 0 : index
    %c0_59 = arith.constant 0 : index
    %151 = vector.load %arg10[%c0_57, %c0_58, %c0_59] : memref<1x1x64xf32, #tpu.memory_space<vmem>>, vector<1x1x64xf32>
    %152 = vector.shape_cast %151 : vector<1x1x64xf32> to vector<1x64xf32>
    %153 = vector.broadcast %152 : vector<1x64xf32> to vector<16x64xf32>
    %154 = arith.addf %150, %153 : vector<16x64xf32>
    %cst_60 = arith.constant 0.000000e+00 : f32
    %155 = vector.broadcast %cst_60 : f32 to vector<16x64xf32>
    %156 = arith.maximumf %154, %155 : vector<16x64xf32>
    %157 = arith.truncf %156 : vector<16x64xf32> to vector<16x64xbf16>
    %c0_61 = arith.constant 0 : index
    %c0_62 = arith.constant 0 : index
    %c0_63 = arith.constant 0 : index
    %158 = vector.load %arg11[%c0_61, %c0_62, %c0_63] : memref<1x64x32xbf16, #tpu.memory_space<vmem>>, vector<1x64x32xbf16>
    %159 = vector.shape_cast %158 : vector<1x64x32xbf16> to vector<64x32xbf16>
    %cst_64 = arith.constant dense<0.000000e+00> : vector<16x32xf32>
    %160 = tpu.matmul %157, %159, %cst_64 {dimension_numbers = #tpu.dot_dimension_numbers<[1], [0], [0], [1], [0, 0, 1, 1], [], []>} : vector<16x64xbf16>, vector<64x32xbf16>, vector<16x32xf32> -> vector<16x32xf32>
    %c0_65 = arith.constant 0 : index
    %c0_66 = arith.constant 0 : index
    %c0_67 = arith.constant 0 : index
    %161 = vector.load %arg12[%c0_65, %c0_66, %c0_67] : memref<1x1x32xf32, #tpu.memory_space<vmem>>, vector<1x1x32xf32>
    %162 = vector.shape_cast %161 : vector<1x1x32xf32> to vector<1x32xf32>
    %163 = vector.broadcast %162 : vector<1x32xf32> to vector<16x32xf32>
    %164 = arith.addf %160, %163 : vector<16x32xf32>
    %165 = arith.addf %146, %164 : vector<16x32xf32>
    %c0_68 = arith.constant 0 : index
    %c0_69 = arith.constant 0 : index
    %c0_70 = arith.constant 0 : index
    %166 = vector.load %arg13[%c0_68, %c0_69, %c0_70] : memref<1x1x32xf32, #tpu.memory_space<vmem>>, vector<1x1x32xf32>
    %167 = vector.shape_cast %166 : vector<1x1x32xf32> to vector<1x32xf32>
    %c0_71 = arith.constant 0 : index
    %c0_72 = arith.constant 0 : index
    %c0_73 = arith.constant 0 : index
    %168 = vector.load %arg14[%c0_71, %c0_72, %c0_73] : memref<1x1x32xf32, #tpu.memory_space<vmem>>, vector<1x1x32xf32>
    %169 = vector.shape_cast %168 : vector<1x1x32xf32> to vector<1x32xf32>
    %cst_74 = arith.constant dense<0.000000e+00> : vector<16xf32>
    %170 = vector.multi_reduction <add>, %165, %cst_74 [1] : vector<16x32xf32> to vector<16xf32>
    %171 = vector.shape_cast %170 : vector<16xf32> to vector<16x1xf32>
    %cst_75 = arith.constant 3.200000e+01 : f32
    %172 = vector.broadcast %cst_75 : f32 to vector<16x1xf32>
    %173 = arith.divf %171, %172 : vector<16x1xf32>
    %174 = vector.broadcast %173 : vector<16x1xf32> to vector<16x32xf32>
    %175 = arith.subf %165, %174 : vector<16x32xf32>
    %176 = arith.mulf %175, %175 : vector<16x32xf32>
    %cst_76 = arith.constant dense<0.000000e+00> : vector<16xf32>
    %177 = vector.multi_reduction <add>, %176, %cst_76 [1] : vector<16x32xf32> to vector<16xf32>
    %178 = vector.shape_cast %177 : vector<16xf32> to vector<16x1xf32>
    %cst_77 = arith.constant 3.200000e+01 : f32
    %179 = vector.broadcast %cst_77 : f32 to vector<16x1xf32>
    %180 = arith.divf %178, %179 : vector<16x1xf32>
    %181 = vector.broadcast %173 : vector<16x1xf32> to vector<16x32xf32>
    %182 = arith.subf %165, %181 : vector<16x32xf32>
    %cst_78 = arith.constant 9.99999974E-6 : f32
    %183 = vector.broadcast %cst_78 : f32 to vector<16x1xf32>
    %184 = arith.addf %180, %183 : vector<16x1xf32>
    %185 = math.rsqrt %184 : vector<16x1xf32>
    %186 = vector.broadcast %185 : vector<16x1xf32> to vector<16x32xf32>
    %187 = arith.mulf %182, %186 : vector<16x32xf32>
    %188 = vector.broadcast %167 : vector<1x32xf32> to vector<16x32xf32>
    %189 = arith.mulf %187, %188 : vector<16x32xf32>
    %190 = vector.broadcast %169 : vector<1x32xf32> to vector<16x32xf32>
    %191 = arith.addf %189, %190 : vector<16x32xf32>
    %c0_79 = arith.constant 0 : index
    %c0_80 = arith.constant 0 : index
    %192 = vector.load %arg18[%c0_79, %c0_80] : memref<16x32xf32, #tpu.memory_space<vmem>>, vector<16x32xf32>
    tpu.vector_store %arg18[%c0_79, %c0_80], %191 {strides = array<i32>} : memref<16x32xf32, #tpu.memory_space<vmem>>, vector<16x32xf32>,
    %c1_i32 = arith.constant 1 : i32
    %193 = arith.cmpi eq, %arg0, %c1_i32 : i32
    %194 = arith.extui %193 : i1 to i32
    %c0_i32_81 = arith.constant 0 : i32
    %195 = arith.cmpi ne, %194, %c0_i32_81 : i32
    scf.if %195 {
      %c0_82 = arith.constant 0 : index
      %c0_83 = arith.constant 0 : index
      %196 = vector.load %arg15[%c0_82, %c0_83] : memref<1x32xf32, #tpu.memory_space<vmem>>, vector<1x32xf32>
      %c0_84 = arith.constant 0 : index
      %c0_85 = arith.constant 0 : index
      %197 = vector.load %arg16[%c0_84, %c0_85] : memref<1x32xf32, #tpu.memory_space<vmem>>, vector<1x32xf32>
      %cst_86 = arith.constant dense<0.000000e+00> : vector<16xf32>
      %198 = vector.multi_reduction <add>, %191, %cst_86 [1] : vector<16x32xf32> to vector<16xf32>
      %199 = vector.shape_cast %198 : vector<16xf32> to vector<16x1xf32>
      %cst_87 = arith.constant 3.200000e+01 : f32
      %200 = vector.broadcast %cst_87 : f32 to vector<16x1xf32>
      %201 = arith.divf %199, %200 : vector<16x1xf32>
      %202 = vector.broadcast %201 : vector<16x1xf32> to vector<16x32xf32>
      %203 = arith.subf %191, %202 : vector<16x32xf32>
      %204 = arith.mulf %203, %203 : vector<16x32xf32>
      %cst_88 = arith.constant dense<0.000000e+00> : vector<16xf32>
      %205 = vector.multi_reduction <add>, %204, %cst_88 [1] : vector<16x32xf32> to vector<16xf32>
      %206 = vector.shape_cast %205 : vector<16xf32> to vector<16x1xf32>
      %cst_89 = arith.constant 3.200000e+01 : f32
      %207 = vector.broadcast %cst_89 : f32 to vector<16x1xf32>
      %208 = arith.divf %206, %207 : vector<16x1xf32>
      %209 = vector.broadcast %201 : vector<16x1xf32> to vector<16x32xf32>
      %210 = arith.subf %191, %209 : vector<16x32xf32>
      %cst_90 = arith.constant 9.99999974E-6 : f32
      %211 = vector.broadcast %cst_90 : f32 to vector<16x1xf32>
      %212 = arith.addf %208, %211 : vector<16x1xf32>
      %213 = math.rsqrt %212 : vector<16x1xf32>
      %214 = vector.broadcast %213 : vector<16x1xf32> to vector<16x32xf32>
      %215 = arith.mulf %210, %214 : vector<16x32xf32>
      %216 = vector.broadcast %196 : vector<1x32xf32> to vector<16x32xf32>
      %217 = arith.mulf %215, %216 : vector<16x32xf32>
      %218 = vector.broadcast %197 : vector<1x32xf32> to vector<16x32xf32>
      %219 = arith.addf %217, %218 : vector<16x32xf32>
      %c0_91 = arith.constant 0 : index
      %c0_92 = arith.constant 0 : index
      %220 = vector.load %arg17[%c0_91, %c0_92] : memref<16x32xf32, #tpu.memory_space<vmem>>, vector<16x32xf32>
      tpu.vector_store %arg17[%c0_91, %c0_92], %219 {strides = array<i32>} : memref<16x32xf32, #tpu.memory_space<vmem>>, vector<16x32xf32>,
    } else {
    }
    return
  }
  func.func @transform_0(%arg0: i32) -> (i32, i32, i32) {
    %c0_i32 = arith.constant 0 : i32
    %c0_i32_0 = arith.constant 0 : i32
    %c0_i32_1 = arith.constant 0 : i32
    %c0_i32_2 = arith.constant 0 : i32
    return %c0_i32, %c0_i32_0, %c0_i32_1 : i32, i32, i32
  }
  func.func @transform_1(%arg0: i32) -> (i32, i32) {
    %c0_i32 = arith.constant 0 : i32
    %c0_i32_0 = arith.constant 0 : i32
    %c0_i32_1 = arith.constant 0 : i32
    return %c0_i32, %c0_i32_0 : i32, i32
  }
  func.func @transform_2(%arg0: i32) -> (i32, i32, i32) {
    %c0_i32 = arith.constant 0 : i32
    %c0_i32_0 = arith.constant 0 : i32
    %c0_i32_1 = arith.constant 0 : i32
    return %arg0, %c0_i32, %c0_i32_0 : i32, i32, i32
  }
  func.func @transform_3(%arg0: i32) -> (i32, i32, i32) {
    %c0_i32 = arith.constant 0 : i32
    %c0_i32_0 = arith.constant 0 : i32
    %c0_i32_1 = arith.constant 0 : i32
    return %arg0, %c0_i32, %c0_i32_0 : i32, i32, i32
  }
  func.func @transform_4(%arg0: i32) -> (i32, i32, i32) {
    %c0_i32 = arith.constant 0 : i32
    %c0_i32_0 = arith.constant 0 : i32
    %c0_i32_1 = arith.constant 0 : i32
    return %arg0, %c0_i32, %c0_i32_0 : i32, i32, i32
  }
  func.func @transform_5(%arg0: i32) -> (i32, i32, i32) {
    %c0_i32 = arith.constant 0 : i32
    %c0_i32_0 = arith.constant 0 : i32
    %c0_i32_1 = arith.constant 0 : i32
    return %arg0, %c0_i32, %c0_i32_0 : i32, i32, i32
  }
  func.func @transform_6(%arg0: i32) -> (i32, i32, i32) {
    %c0_i32 = arith.constant 0 : i32
    %c0_i32_0 = arith.constant 0 : i32
    %c0_i32_1 = arith.constant 0 : i32
    return %arg0, %c0_i32, %c0_i32_0 : i32, i32, i32
  }
  func.func @transform_7(%arg0: i32) -> (i32, i32, i32) {
    %c0_i32 = arith.constant 0 : i32
    %c0_i32_0 = arith.constant 0 : i32
    %c0_i32_1 = arith.constant 0 : i32
    return %arg0, %c0_i32, %c0_i32_0 : i32, i32, i32
  }
  func.func @transform_8(%arg0: i32) -> (i32, i32, i32) {
    %c0_i32 = arith.constant 0 : i32
    %c0_i32_0 = arith.constant 0 : i32
    %c0_i32_1 = arith.constant 0 : i32
    return %arg0, %c0_i32, %c0_i32_0 : i32, i32, i32
  }
  func.func @transform_9(%arg0: i32) -> (i32, i32, i32) {
    %c0_i32 = arith.constant 0 : i32
    %c0_i32_0 = arith.constant 0 : i32
    %c0_i32_1 = arith.constant 0 : i32
    return %arg0, %c0_i32, %c0_i32_0 : i32, i32, i32
  }
  func.func @transform_10(%arg0: i32) -> (i32, i32, i32) {
    %c0_i32 = arith.constant 0 : i32
    %c0_i32_0 = arith.constant 0 : i32
    %c0_i32_1 = arith.constant 0 : i32
    return %arg0, %c0_i32, %c0_i32_0 : i32, i32, i32
  }
  func.func @transform_11(%arg0: i32) -> (i32, i32, i32) {
    %c0_i32 = arith.constant 0 : i32
    %c0_i32_0 = arith.constant 0 : i32
    %c0_i32_1 = arith.constant 0 : i32
    return %arg0, %c0_i32, %c0_i32_0 : i32, i32, i32
  }
  func.func @transform_12(%arg0: i32) -> (i32, i32, i32) {
    %c0_i32 = arith.constant 0 : i32
    %c0_i32_0 = arith.constant 0 : i32
    %c0_i32_1 = arith.constant 0 : i32
    return %arg0, %c0_i32, %c0_i32_0 : i32, i32, i32
  }
  func.func @transform_13(%arg0: i32) -> (i32, i32, i32) {
    %c0_i32 = arith.constant 0 : i32
    %c0_i32_0 = arith.constant 0 : i32
    %c0_i32_1 = arith.constant 0 : i32
    return %arg0, %c0_i32, %c0_i32_0 : i32, i32, i32
  }
  func.func @transform_14(%arg0: i32) -> (i32, i32) {
    %c0_i32 = arith.constant 0 : i32
    %c0_i32_0 = arith.constant 0 : i32
    %c0_i32_1 = arith.constant 0 : i32
    return %c0_i32, %c0_i32_0 : i32, i32
  }
  func.func @transform_15(%arg0: i32) -> (i32, i32) {
    %c0_i32 = arith.constant 0 : i32
    %c0_i32_0 = arith.constant 0 : i32
    %c0_i32_1 = arith.constant 0 : i32
    return %c0_i32, %c0_i32_0 : i32, i32
  }
  func.func @transform_16(%arg0: i32) -> (i32, i32) {
    %c0_i32 = arith.constant 0 : i32
    %c0_i32_0 = arith.constant 0 : i32
    %c0_i32_1 = arith.constant 0 : i32
    return %c0_i32, %c0_i32_0 : i32, i32
  }
}

</mosaic_0001>

<bundles_post_ra>
// kernel: encoder_forward.1
= control target key start
LH: loop header
LB: loop body
LE: loop exit
PB: predicated region body
PF: predicated region fallthrough
CT: control target
= control target key end

     0   :  { %s3077_s0 = inlined_call_operand.vmem [shape: f32[2,1,8], index: 0, kind: input, shape index: {}]   ;;  %s3078_s1 = inlined_call_operand.hbm [shape: f32[16,32], index: 1, kind: input, shape index: {}]   ;;  %s3079_s2 = inlined_call_operand.vmem [shape: bf16[2,32,96], index: 2, kind: input, shape index: {}]   ;;  %s3080_s3 = inlined_call_operand.vmem [shape: f32[2,1,96], index: 3, kind: input, shape index: {}]   ;;  %s3081_s4 = inlined_call_operand.vmem [shape: bf16[2,32,32], index: 4, kind: input, shape index: {}]   ;;  %s3082_s5 = inlined_call_operand.vmem [shape: f32[2,1,32], index: 5, kind: input, shape index: {}]   ;;  %s3083_s6 = inlined_call_operand.vmem [shape: f32[2,1,32], index: 6, kind: input, shape index: {}]   ;;  %s3084_s7 = inlined_call_operand.hbm [shape: f32[2,1,32], index: 7, kind: input, shape index: {}]   ;;  %s3085_s8 = inlined_call_operand.vmem [shape: bf16[2,32,64], index: 8, kind: input, shape index: {}]   ;;  %s3086_s9 = inlined_call_operand.hbm [shape: f32[2,1,64], index: 9, kind: input, shape index: {}]   ;;  %s3087_s10 = inlined_call_operand.vmem [shape: bf16[2,64,32], index: 10, kind: input, shape index: {}]   ;;  %s3088_s11 = inlined_call_operand.hbm [shape: f32[2,1,32], index: 11, kind: input, shape index: {}]   ;;  %s3089_s12 = inlined_call_operand.vmem [shape: f32[2,1,32], index: 12, kind: input, shape index: {}]   ;;  %s3090_s13 = inlined_call_operand.hbm [shape: f32[2,1,32], index: 13, kind: input, shape index: {}]   ;;  %s3091_s14 = inlined_call_operand.vmem [shape: f32[1,32], index: 14, kind: input, shape index: {}]   ;;  %s3092_s15 = inlined_call_operand.hbm [shape: f32[1,32], index: 15, kind: input, shape index: {}]   ;;  %s3093_s16 = inlined_call_operand.hbm [shape: f32[16,32], index: 16, kind: output, shape index: {}]  }
   0x1   :  { %3098 = sst [smem:[#allocation23_spill]] %s3077_s0 }
   0x2   :  { %3099 = sst [smem:[#allocation24_spill]] %s3078_s1 }
   0x3   :  { %3100 = sst [smem:[#allocation25_spill]] %s3079_s2 }
   0x4   :  { %3101 = sst [smem:[#allocation26_spill]] %s3080_s3 }
   0x5   :  { %3102 = sst [smem:[#allocation27_spill]] %s3081_s4 }
   0x6   :  { %3103 = sst [smem:[#allocation28_spill]] %s3083_s6 }
   0x7   :  { %3104 = sst [smem:[#allocation29_spill]] %s3084_s7 }
   0x8   :  { %3105 = sst [smem:[#allocation30_spill]] %s3085_s8 }
   0x9   :  { %3106 = sst [smem:[#allocation31_spill]] %s3087_s10 }
   0xa   :  { %3107 = sst [smem:[#allocation32_spill]] %s3088_s11 }
   0xb   :  { %3108 = sst [smem:[#allocation33_spill]] %s3089_s12 }
   0xc   :  { %3109 = sst [smem:[#allocation34_spill]] %s3091_s14 }
   0xd   :  { %3110 = sst [smem:[#allocation35_spill]] %s3093_s16 }
   0xe   :  { %21 = vsyncpa [#allocation4], 0 }
   0xf   :  { %22 = vsyncpa [#allocation7], 0 }
  0x10   :  { %24 = vsyncpa [#allocation7 + $0x1], 0 }
  0x11   :  { %25 = vsyncpa [#allocation10], 0 }
  0x12   :  { %27 = vsyncpa [#allocation10 + $0x1], 0 }
  0x13   :  { %28 = vsyncpa [#allocation13], 0 }
  0x14   :  { %29 = vsyncpa [#allocation5], 0  ;;  %s2632_s21 = smov 0   ;;  %s2634_s22 = smov 0  }
  0x15   :  { %s2636_s23 = smov 0   ;;  %s2638_s24 = smov 0  }
  0x16 LB: > { %3111 = sst [smem:[#allocation20_spill]] %s2520_s23  ;;  %s2653_s25 = sadd.s32 1, %s2524_s24   ;;  %s2524_s24 = sphi %s2638_s24, %s3139_s24   ;;  %s2520_s23 = sphi %s2636_s23, %s3141_s23   ;;  %s2516_s22 = sphi %s2634_s22, %s3143_s22   ;;  %s2512_s21 = sphi %s2632_s21, %s3142_s21  }
  0x17   : > { %3112 = sst [smem:[#allocation21_spill]] %s2653_s25  ;;  %s214_s26 = sadd.s32 1, %s2520_s23 }
  0x18   : > { %s211_s27 = ssub.s32 %s2524_s24, %s2653_s25  ;;  %p221_p0 = scmp.ne.s32.totalorder %s2520_s23, %s2516_s22 }
  0x19   : > { %p212_p1 = scmp.eq.s32.totalorder %s211_s27, 0  ;;  %p222_p2 = scmp.eq.s32.totalorder %s2524_s24, 0 }
  0x1a   : > { %p2135_p3 = scmp.lt.s32.totalorder %s2524_s24, 2  ;;  %s2667_s30 = sand.u32 1, %s2520_s23  }
  0x1b   : > { %s2663_s28 = scalar_select %p212_p1, %s2520_s23, %s214_s26  }
  0x1c   : > { %p223_p4 = por %p222_p2, %p221_p0  ;;  %s3114_s7 = sld [smem:[#allocation29_spill]] }
  0x1d   : > { %3113 = sst [smem:[#allocation22_spill]] %s2663_s28  ;;  %s539_s20 = scalar_lea.vmem [#allocation6], %s2667_s30 }
  0x1e   : > { %s546_s25 = sshll.u32 %s539_s20, 4  ;;  %p2674_p5 = pnand %p2135_p3, %p223_p4  ;;  %s547_s25 = int_to_ptr.vmem [resolvable:$true] %s546_s25 }
  0x1f   : > { %s3116_s11 = sld [smem:[#allocation32_spill]]  ;;  %s3117_s0 = sand.u32 1, %s2524_s24  }
  0x20   : > { %s2686_s17 = scalar_lea.sflag [#allocation7], %s3117_s0  ;;  %p2270_p7 = pneg %p2674_p5 }
  0x22   : > { %s542_s18 = scalar_lea.hbm %s3114_s7, %s2524_s24  ;;  %s2273_s26 = scalar_lea.hbm %s3114_s7, 2 }
  0x23   : > { %s544_s19 = sshll.u32 %s542_s18, 4  ;;  %s545_s19 = int_to_ptr.hbm [resolvable:$true] %s544_s19 }
  0x24   : > { %s2266_s18 = sshra.s32 %s545_s19, 4  ;;  %s2267_s18 = int_to_ptr.hbm [resolvable:$true] %s2266_s18 }
  0x25   : > { %s592_s29 = scalar_lea.hbm %s3116_s11, %s2524_s24  ;;  %s2268_s20 = scalar_lea.hbm %s2267_s18, 1 }
  0x26   : > { %s2682_s23 = sshll.u32 %s592_s29, 4  ;;  %p2269_p6 = scmp.ne.s32.totalorder %s2267_s18, %s2268_s20  ;;  %s595_s23 = int_to_ptr.hbm [resolvable:$true] %s2682_s23 }
  0x27   : > { %p2274_p10 = scmp.lt.s32.totalorder %s2267_s18, %s3114_s7  ;;  %p2275_p11 = scmp.lt.s32.totalorder %s2273_s26, %s2268_s20 }
  0x28   : > { %p2271_p8 = pnand %p2270_p7, %p2269_p6 }
  0x29   : > { %p2276_p12 = por %p2275_p11, %p2274_p10 }
  0x2a   : > { %p2272_p9 = pneg %p2271_p8 }
  0x2c   : > { %p2277_p13 = pnand %p2276_p12, %p2272_p9 }
  0x2e   : > { %2280 = shalt.err (!%p2277_p13)
}
  0x2f   : > { %2123 = dma.hbm_to_vmem [thread:$0]  (!%p2674_p5), %s545_s19, 16, %s547_s25, %s2686_s17  }
  0x30   : > { %s589_s0 = scalar_lea.vmem [#allocation9], %s2667_s30  ;;  %s3118_s28 = sand.u32 1, %s2524_s24  }
  0x31   : > { %s596_s16 = sshll.u32 %s589_s0, 4  ;;  %s2706_s12 = scalar_lea.sflag [#allocation10], %s3118_s28  ;;  %s597_s16 = int_to_ptr.vmem [resolvable:$true] %s596_s16 }
  0x32   : > { %s2296_s14 = sshra.s32 %s595_s23, 4  ;;  %s2303_s29 = scalar_lea.hbm %s3116_s11, 2  ;;  %s2297_s14 = int_to_ptr.hbm [resolvable:$true] %s2296_s14 }
  0x33   : > { %s2298_s18 = scalar_lea.hbm %s2297_s14, 1  ;;  %p2304_p3 = scmp.lt.s32.totalorder %s2297_s14, %s3116_s11 }
  0x34   : > { %p2299_p0 = scmp.ne.s32.totalorder %s2297_s14, %s2298_s18  ;;  %p2305_p4 = scmp.lt.s32.totalorder %s2303_s29, %s2298_s18 }
  0x36   : > { %p2301_p1 = pnand %p2299_p0, %p2270_p7  ;;  %p2306_p6 = por %p2305_p4, %p2304_p3 }
  0x38   : > { %p2302_p2 = pneg %p2301_p1 }
  0x3a   : > { %p2307_p8 = pnand %p2306_p6, %p2302_p2 }
  0x3c   : > { %2310 = shalt.err (!%p2307_p8)
}
  0x3d   : > { %2129 = dma.hbm_to_vmem [thread:$0]  (!%p2674_p5), %s595_s23, 16, %s597_s16, %s2706_s12  }
  0x3e   : > { %s2721_s0 = sadd.s32 4294967295, %s2524_s24   ;;  %p227_p9 = scmp.ne.s32.totalorder %s2516_s22, %s2512_s21 }
  0x3f   : > { %p228_p10 = scmp.eq.s32.totalorder %s2721_s0, 0  ;;  %p1998_p11 = scmp.ge.s32.totalorder %s2524_s24, 1 }
  0x40   : > { %p457_p12 = scmp.lt.s32.totalorder %s2524_s24, 3  ;;  %p1999_p0 = scmp.ne.s32.totalorder %s2721_s0, 0 }
  0x41   : > { %p2730_p13 = por %p228_p10, %p227_p9  ;;  %s3121_s1 = sld [smem:[#allocation24_spill]] }
  0x42   : > { %p2735_p1 = pnand %p1998_p11, %p457_p12  ;;  %s2526_s21 = smov [#allocation3]  }
  0x43   : > { %s473_s20 = sshll.u32 %s2526_s21, 4  ;;  %s489_s25 = sshll.u32 %s3092_s15, 4  ;;  %s474_s20 = int_to_ptr.vmem [resolvable:$true] %s473_s20  ;;  %s490_s25 = int_to_ptr.hbm [resolvable:$true] %s489_s25 }
  0x44   : > { %p2113_p2 = pneg %p2735_p1  ;;  %s2527_s19 = smov 128  }
  0x45   : > { %s2528_s7 = smov 8   ;;  %s2529_s23 = smov [#allocation12]  }
  0x46   : > { %p2114_p3 = pnand %p2113_p2, %p228_p10  ;;  %s491_s16 = sshll.u32 %s2529_s23, 4  ;;  %s492_s16 = int_to_ptr.vmem [resolvable:$true] %s491_s16 }
  0x47   : > { %s471_s18 = sshll.u32 %s3121_s1, 4  ;;  %s567_s10 = scalar_lea.hbm %s3086_s9, %s2524_s24  ;;  %s472_s18 = int_to_ptr.hbm [resolvable:$true] %s471_s18 }
  0x48   : > { %2116 = dma.hbm_to_vmem [thread:$0]  (!%p2114_p3), %s472_s18, 256, %s474_s20, [#allocation4], %s2527_s19, %s2527_s19, %s2528_s7  }
  0x49   : > { %2119 = dma.hbm_to_vmem [thread:$0]  (!%p2114_p3), %s490_s25, 16, %s492_s16, [#allocation13]  }
  0x4a   : > { %s569_s21 = sshll.u32 %s567_s10, 4  ;;  %s564_s8 = scalar_lea.vmem [#allocation8], %s2667_s30  ;;  %s570_s21 = int_to_ptr.hbm [resolvable:$true] %s569_s21 }
  0x4b   : > { %s571_s6 = sshll.u32 %s564_s8, 4  ;;  %s2386_s26 = sshra.s32 %s570_s21, 4  ;;  %s572_s6 = int_to_ptr.vmem [resolvable:$true] %s571_s6  ;;  %s2387_s26 = int_to_ptr.hbm [resolvable:$true] %s2386_s26 }
  0x4c   : > { %s2388_s29 = scalar_lea.hbm %s2387_s26, 1  ;;  %s2393_s20 = scalar_lea.hbm %s3086_s9, 2 }
  0x4d   : > { %p2389_p4 = scmp.ne.s32.totalorder %s2387_s26, %s2388_s29  ;;  %p2394_p9 = scmp.lt.s32.totalorder %s2387_s26, %s3086_s9 }
  0x4e   : > { %p2395_p11 = scmp.lt.s32.totalorder %s2393_s20, %s2388_s29 }
  0x4f   : > { %p2391_p6 = pnand %p2389_p4, %p2270_p7 }
  0x50   : > { %p2396_p12 = por %p2395_p11, %p2394_p9 }
  0x51   : > { %p2392_p8 = pneg %p2391_p6 }
  0x53   : > { %p2397_p2 = pnand %p2396_p12, %p2392_p8 }
  0x55   : > { %2400 = shalt.err (!%p2397_p2)
}
  0x56   : > { %2126 = dma.hbm_to_vmem [thread:$0]  (!%p2674_p5), %s570_s21, 16, %s572_s6, %s2686_s17  }
  0x57   : > { %s615_s25 = scalar_lea.hbm %s3090_s13, %s2524_s24  ;;  %s612_s23 = scalar_lea.vmem [#allocation11], %s2667_s30 }
  0x58   : > { %s617_s19 = sshll.u32 %s615_s25, 4  ;;  %s619_s16 = sshll.u32 %s612_s23, 4  ;;  %s618_s19 = int_to_ptr.hbm [resolvable:$true] %s617_s19  ;;  %s620_s16 = int_to_ptr.vmem [resolvable:$true] %s619_s16 }
  0x59   : > { %s2416_s26 = sshra.s32 %s618_s19, 4  ;;  %s2423_s6 = scalar_lea.hbm %s3090_s13, 2  ;;  %s2417_s26 = int_to_ptr.hbm [resolvable:$true] %s2416_s26 }
  0x5a   : > { %s2418_s29 = scalar_lea.hbm %s2417_s26, 1  ;;  %p2424_p8 = scmp.lt.s32.totalorder %s2417_s26, %s3090_s13 }
  0x5b   : > { %p2419_p3 = scmp.ne.s32.totalorder %s2417_s26, %s2418_s29  ;;  %p2425_p9 = scmp.lt.s32.totalorder %s2423_s6, %s2418_s29 }
  0x5d   : > { %p2421_p4 = pnand %p2419_p3, %p2270_p7  ;;  %p2426_p11 = por %p2425_p9, %p2424_p8 }
  0x5f   : > { %p2422_p6 = pneg %p2421_p4 }
  0x61   : > { %p2427_p12 = pnand %p2426_p11, %p2422_p6 }
  0x63   : > { %2430 = shalt.err (!%p2427_p12)
}
  0x64   : > { %2132 = dma.hbm_to_vmem [thread:$0]  (!%p2674_p5), %s618_s19, 16, %s620_s16, %s2706_s12  }
  0x65   : > { %628 = sbr.rel (%p2735_p1) target bundleno = 2419 (0x973), region = 84 }
  0x6a   : > { %2491 = dma.done.wait (%p228_p10), [#allocation4], 256  }
  0x6b   : > { %2493 = vsyncadd (%p228_p10), [#allocation4], 4294967040  ;;  %s635_s24 = sand.u32 1, %s2721_s0   ;;  %s2791_s30 = sand.u32 1, %s2516_s22  }
  0x6c   : > { %s636_s20 = scalar_lea.sflag [#allocation7], %s635_s24 }
  0x6d   : > { %2495 = dma.done.wait (%p2730_p13), %s636_s20, 32  }
  0x6e   : > { %2497 = vsyncadd (%p2730_p13), %s636_s20, 4294967264  ;;  %s654_s14 = scalar_lea.sflag [#allocation10], %s635_s24 }
  0x6f   : > { %2499 = dma.done.wait (%p2730_p13), %s654_s14, 32  }
  0x70   : > { %2501 = vsyncadd (%p2730_p13), %s654_s14, 4294967264 }
  0x71   : > { %2503 = dma.done.wait (%p228_p10), [#allocation13], 16  }
  0x72   : > { %2505 = vsyncadd (%p228_p10), [#allocation13], 4294967280  ;;  %p758_p5 = scmp.lt.s32.totalorder %s2721_s0, 1  ;;  %s3122_s3 = sld [smem:[#allocation26_spill]] }
  0x73   : > { %s3123_s2 = sld [smem:[#allocation25_spill]] }
  0x74   : > { %s2811_s8 = scalar_select %p758_p5, %s2721_s0, 1 }
  0x75   : > { %s3124_s4 = sld [smem:[#allocation27_spill]] }
  0x76   : > { %s2079_s28 = sshll.u32 %s2811_s8, 4  ;;  %s773_s21 = scalar_lea.vmem %s3082_s5, %s2811_s8 }
  0x77   : > { %s3125_s14 = sld [smem:[#allocation28_spill]]  ;;  %s2082_s23 = sshll.u32 %s2811_s8, 5 }
  0x78   : > { %s765_s19 = scalar_lea.vmem %s3122_s3, %s2811_s8  ;;  %s3126_s25 = sld [smem:[#allocation30_spill]] }
  0x79   : > { %s762_s26 = scalar_lea.vmem %s3123_s2, %s2079_s28  ;;  %s3127_s2 = sld [smem:[#allocation31_spill]] }
  0x7b   : > { %s2824_s18 = scalar_lea.vmem %s3124_s4, %s2079_s28  ;;  %s3128_s4 = sld [smem:[#allocation33_spill]] }
  0x7d   : > { %s776_s11 = scalar_lea.vmem %s3125_s14, %s2811_s8  ;;  %794 = sbr.rel (%p1999_p0) target bundleno = 133 (0x85), region = 112 }
  0x7e   : > { %s2837_s12 = scalar_lea.vmem %s3126_s25, %s2079_s28 }
  0x7f   : > { %s2843_s29 = scalar_lea.vmem %s3127_s2, %s2082_s23 }
  0x81   : > { %s789_s6 = scalar_lea.vmem %s3128_s4, %s2811_s8 }
  0x82   : > { %v795_v0 = vld [vmem:[#allocation3] sm:$0xff]  ;;  %vm797_vm0 = vcmask 261120   ;;  %v796_v1 = vld [vmem:[#allocation3 + $0x8] sm:$0xff] }
  0x83   : > { %798 = vst.msk [vmem:[#allocation2] sm:$0xff] %vm797_vm0, %v795_v0 }
  0x84   : > { %799 = vst.msk [vmem:[#allocation2 + $0x8] sm:$0xff] %vm797_vm0, %v796_v1 }
  0x85 PF: > { %v2084_v2 = vld [vmem:[%s762_s26 + $0x8] sm:$0xff]  ;;  %v2083_v3 = vld [vmem:[%s762_s26] sm:$0xff]  ;;  %vm823_vm1 = vcmask 261120   ;;  %s2530_s2 = smov 120   ;;  %s2531_s3 = smov 88   ;;  %vm850_vm2 = vcmask 64512  }
  0x86   : > { %833 = vmatpush.bf16.msra.mxu0 %v2084_v2  ;;  %v2208_v7 = vld [vmem:[%s765_s19] ss:$0 sm:$0xff]  ;;  %s2532_s4 = smov 96   ;;  %s2533_s27 = smov 112   ;;  %vm961_vm3 = vcmask 1043456  }
  0x87   : > { %s2534_s1 = smov 80   ;;  %s2535_s28 = smov 72  }
  0x88   : > { %s2536_s19 = smov 104   ;;  %s3129_s24 = sld [smem:[#allocation23_spill]] }
  0x89   : > { %s2537_s25 = smov 56   ;;  %s2538_s23 = smov 64  }
  0x8a   : > { %v2851_v4 = vld [vmem:[#allocation2] sm:$0xff]  ;;  %834 = vmatpush.bf16.msra.mxu0 %v2083_v3  ;;  %s2539_s16 = smov 40   ;;  %s2540_s7 = smov 48  }
  0x8b   : > { %v2853_v5 = vld [vmem:[#allocation2 + $0x8] sm:$0xff]  ;;  %p2074_p7 = scmp.ne.s32.totalorder %s2721_s0, 1 }
  0x8c   : > { %v802_v6 = vpack.c.bf16 %v2853_v5, %v2851_v4 }
  0x8e   : > { %2022 = vmatmul.msk.bf16.vlgmr.msra.gmra.mxu0 %vm823_vm1, %v802_v6  ;;  %s3130_s20 = smov %s3129_s24  ;;  %v2209_v40 = vld [vmem:[%s3129_s24] ss:$0 sm:$0xff]  ;;  %s3136_s24 = scalar_lea.vmem [#allocation11], %s2791_s30 }
  0x8f   : > { %v2210_v51 = vld [vmem:[%s3130_s20 + $0x1] ss:$0 sm:$0xff] }
 0x10b   : > { %v836_v8 = vpop.f32.mrf.mxu0 }
 0x10c   : > { %v837_v9 = vadd.f32 %v2208_v7, %v836_v8 }
 0x10e   : > { %v843_v10 = vpack.c.bf16 %v837_v9, %v837_v9 }
 0x110   : > { %v846_v11 = vunpack.c.l.b16 %v843_v10 }
 0x112   : > { %v2858_v12 = vpack.c.b16 %v846_v11, %v846_v11 }
 0x113   : > { %v838_v13 = vpop.f32.mrf.mxu0 }
 0x114   : > { %v839_v14 = vadd.f32 %v2208_v7, %v838_v13  ;;  %999 = vrot.lane.b32.xlu2 %v2858_v12, %s2530_s2  ;;  %1001 = vrot.lane.b32.xlu1 %v2858_v12, %s2531_s3 }
 0x115   : > { %848 = vrot.lane.b32.xlu0 %v2858_v12, %s2532_s4 }
 0x116   : > { %v844_v15 = vpack.c.bf16 %v839_v14, %v839_v14 }
 0x118   : > { %v871_v16 = vunpack.c.l.b16 %v844_v15 }
 0x11a   : > { %v2863_v17 = vpack.c.b16 %v871_v16, %v871_v16 }
 0x11c   : > { %1022 = vrot.lane.b32.xlu2 %v2863_v17, %s2530_s2  ;;  %1024 = vrot.lane.b32.xlu1 %v2863_v17, %s2531_s3  ;;  %s2541_s2 = smov 8   ;;  %s2542_s3 = smov 16  }
 0x11d   : > { %873 = vrot.lane.b32.xlu0 %v2863_v17, %s2532_s4  ;;  %s2543_s4 = smov 24  }
 0x124   : > { %1143 = vrot.lane.b32.xlu2 %v2858_v12, %s2533_s27  ;;  %1168 = vrot.lane.b32.xlu1 %v2863_v17, %s2534_s1 }
 0x125   : > { %1145 = vrot.lane.b32.xlu0 %v2858_v12, %s2534_s1 }
 0x12c   : > { %1312 = vrot.lane.b32.xlu2 %v2863_v17, %s2535_s28  ;;  %1289 = vrot.lane.b32.xlu1 %v2858_v12, %s2535_s28  ;;  %s3132_s28 = scalar_lea.vmem [#allocation6], %s2791_s30 }
 0x12d   : > { %1166 = vrot.lane.b32.xlu0 %v2863_v17, %s2533_s27 }
 0x134   : > { %1310 = vrot.lane.b32.xlu1 %v2863_v17, %s2536_s19 }
 0x135   : > { %1287 = vrot.lane.b32.xlu0 %v2858_v12, %s2536_s19  ;;  %s3134_s19 = scalar_lea.vmem [#allocation9], %s2791_s30 }
 0x16e   : > { %v1000_v18 = vpop.permute.xlu2 %999 }
 0x176   : > { %v1023_v23 = vpop.permute.xlu2 %1022 }
 0x17e   : > { %v1144_v28 = vpop.permute.xlu2 %1143 }
 0x186   : > { %v1002_v19 = vpop.permute.xlu1 %1001  ;;  %v1313_v33 = vpop.permute.xlu2 %1312 }
 0x187   : > { %v849_v20 = vpop.permute.xlu0 %848  ;;  %v1007_v21 = vsel %vm850_vm2, %v1002_v19, 0  ;;  %v1318_v36 = vsel %vm850_vm2, %v1313_v33, 0 }
 0x188   : > { %v855_v22 = vsel %vm850_vm2, %v849_v20, 0  ;;  %1016 = vmatpush.bf16.xpose.msrb.mxu0 %v1007_v21 }
 0x189   : > { %864 = vmatpush.bf16.xpose.msra.mxu1 %v855_v22 }
 0x18e   : > { %v1025_v24 = vpop.permute.xlu1 %1024 }
 0x18f   : > { %v874_v25 = vpop.permute.xlu0 %873  ;;  %2027 = vmatmul.msk.bf16.vlgmr.msrb.gmra.mxu0 %vm850_vm2, %v1000_v18  ;;  %v1030_v26 = vsel %vm850_vm2, %v1025_v24, 0 }
 0x190   : > { %2023 = vmatmul.msk.bf16.vlgmr.msra.gmra.mxu1 %vm850_vm2, %v843_v10  ;;  %v879_v27 = vsel %vm850_vm2, %v874_v25, 0 }
 0x191   : > { %888 = vmatpush.bf16.xpose.msra.mxu2 %v879_v27  ;;  %1039 = vmatpush.bf16.xpose.msrb.mxu1 %v1030_v26 }
 0x196   : > { %v1169_v29 = vpop.permute.xlu1 %1168 }
 0x197   : > { %v1174_v30 = vsel %vm850_vm2, %v1169_v29, 0  ;;  %v1146_v31 = vpop.permute.xlu0 %1145 }
 0x198   : > { %v1151_v32 = vsel %vm850_vm2, %v1146_v31, 0  ;;  %2024 = vmatmul.msk.bf16.vlgmr.msra.gmra.mxu2 %vm850_vm2, %v844_v15 }
 0x199   : > { %1183 = vmatpush.bf16.xpose.msra.mxu1 %v1174_v30  ;;  %1160 = vmatpush.bf16.xpose.msra.mxu0 %v1151_v32 }
 0x19e   : > { %v1290_v34 = vpop.permute.xlu1 %1289 }
 0x19f   : > { %v1295_v35 = vsel %vm850_vm2, %v1290_v34, 0  ;;  %v1167_v37 = vpop.permute.xlu0 %1166 }
 0x1a0   : > { %2028 = vmatmul.msk.bf16.vlgmr.msrb.gmra.mxu1 %vm850_vm2, %v1023_v23  ;;  %2031 = vmatmul.msk.bf16.vlgmr.msra.gmra.mxu0 %vm850_vm2, %v1144_v28 }
 0x1a1   : > { %1327 = vmatpush.bf16.xpose.msrb.mxu1 %v1318_v36  ;;  %1304 = vmatpush.bf16.xpose.msrb.mxu0 %v1295_v35 }
 0x1a6   : > { %v1311_v39 = vpop.permute.xlu1 %1310 }
 0x1a7   : > { %v1288_v38 = vpop.permute.xlu0 %1287 }
 0x1b0   : > { %2032 = vmatmul.msk.bf16.vlgmr.msra.gmra.mxu1 %vm850_vm2, %v1167_v37  ;;  %2035 = vmatmul.msk.bf16.vlgmr.msrb.gmra.mxu0 %vm850_vm2, %v1288_v38 }
 0x1c0   : > { %2036 = vmatmul.msk.bf16.vlgmr.msrb.gmra.mxu1 %vm850_vm2, %v1311_v39 }
 0x20c   : > { %v1018_v41 = vpop.f32.mrf.mxu0 }
 0x20d   : > { %v866_v42 = vpop.f32.mrf.mxu1  ;;  %v1045_v43 = vmul.f32 0.35355338, %v1018_v41 }
 0x20e   : > { %v894_v44 = vmul.f32 0.35355338, %v866_v42 }
 0x20f   : > { %v1047_v45 = vadd.f32 %v2209_v40, %v1045_v43 }
 0x210   : > { %v902_v46 = vadd.f32 %v2209_v40, %v894_v44 }
 0x211   : > { %v1049_v47 = vsel %vm850_vm2, %v1047_v45, -inf }
 0x212   : > { %1050 = vmax.xlane.f32.xlu1 %v1049_v47  ;;  %v904_v48 = vsel %vm850_vm2, %v902_v46, -inf }
 0x213   : > { %905 = vmax.xlane.f32.xlu2 %v904_v48 }
 0x214   : > { %v1020_v49 = vpop.f32.mrf.mxu0 }
 0x215   : > { %v868_v50 = vpop.f32.mrf.mxu1 }
 0x21b   : > { %v890_v52 = vpop.f32.mrf.mxu2 }
 0x21c   : > { %v895_v53 = vmul.f32 0.35355338, %v890_v52 }
 0x21d   : > { %v1041_v54 = vpop.f32.mrf.mxu1  ;;  %v1162_v55 = vpop.f32.mrf.mxu0 }
 0x21e   : > { %v1046_v56 = vmul.f32 0.35355338, %v1041_v54  ;;  %v1189_v57 = vmul.f32 0.35355338, %v1162_v55  ;;  %v903_v58 = vadd.f32 %v2210_v51, %v895_v53 }
 0x220   : > { %v907_v59 = vsel %vm850_vm2, %v903_v58, -inf  ;;  %v1048_v60 = vadd.f32 %v2210_v51, %v1046_v56  ;;  %v2901_v61 = vadd.f32 %v2209_v40, %v1189_v57 }
 0x221   : > { %908 = vmax.xlane.f32.xlu0 %v907_v59 }
 0x222   : > { %v1052_v62 = vsel %vm850_vm2, %v1048_v60, -inf  ;;  %v1193_v19 = vsel %vm850_vm2, %v2901_v61, -inf }
 0x223   : > { %1053 = vmax.xlane.f32.xlu2 %v1052_v62  ;;  %v892_v63 = vpop.f32.mrf.mxu2 }
 0x225   : > { %v1043_v0 = vpop.f32.mrf.mxu1  ;;  %v1164_v1 = vpop.f32.mrf.mxu0 }
 0x22b   : > { %1122 = vrot.lane.b32.xlu1 %v2863_v17, %s2537_s25 }
 0x22d   : > { %v1185_v2 = vpop.f32.mrf.mxu1  ;;  %v1306_v3 = vpop.f32.mrf.mxu0 }
 0x22e   : > { %v1190_v6 = vmul.f32 0.35355338, %v1185_v2  ;;  %v1333_v18 = vmul.f32 0.35355338, %v1306_v3 }
 0x230   : > { %v2905_v7 = vadd.f32 %v2210_v51, %v1190_v6  ;;  %v1335_v20 = vadd.f32 %v2209_v40, %v1333_v18 }
 0x232   : > { %v1196_v8 = vsel %vm850_vm2, %v2905_v7, -inf  ;;  %v1337_v21 = vsel %vm850_vm2, %v1335_v20, -inf }
 0x233   : > { %1197 = vmax.xlane.f32.xlu0 %v1196_v8 }
 0x235   : > { %v1187_v9 = vpop.f32.mrf.mxu1  ;;  %v1308_v10 = vpop.f32.mrf.mxu0 }
 0x23b   : > { %956 = vrot.lane.b32.xlu2 %v2858_v12, %s2538_s23 }
 0x23d   : > { %v1329_v11 = vpop.f32.mrf.mxu1 }
 0x23e   : > { %v1334_v13 = vmul.f32 0.35355338, %v1329_v11 }
 0x240   : > { %v1336_v14 = vadd.f32 %v2210_v51, %v1334_v13 }
 0x242   : > { %v1340_v15 = vsel %vm850_vm2, %v1336_v14, -inf }
 0x243   : > { %1341 = vmax.xlane.f32.xlu0 %v1340_v15 }
 0x245   : > { %v1331_v16 = vpop.f32.mrf.mxu1 }
 0x257   : > { %978 = vrot.lane.b32.xlu0 %v2863_v17, %s2538_s23 }
 0x264   : > { %1194 = vmax.xlane.f32.xlu2 %v1193_v19 }
 0x26c   : > { %1338 = vmax.xlane.f32.xlu2 %v1337_v21 }
 0x284   : > { %1101 = vrot.lane.b32.xlu2 %v2858_v12, %s2537_s25 }
 0x285   : > { %v1051_v22 = vpop.xlane.xlu1 %1050 }
 0x286   : > { %v1055_v23 = vsub.f32 %v1047_v45, %v1051_v22  ;;  %v906_v24 = vpop.xlane.xlu2 %905 }
 0x287   : > { %v910_v25 = vsub.f32 %v902_v46, %v906_v24 }
 0x288   : > { %v1057_v26 = vmul.f32 1.442695, %v1055_v23 }
 0x289   : > { %v912_v27 = vmul.f32 1.442695, %v910_v25 }
 0x28a   : > { %2218 = vpow2.f32 %v1057_v26 }
 0x28b   : > { %2220 = vpow2.f32 %v912_v27 }
 0x290   : > { %v2916_v28 = vpop.eup %2218 }
 0x291   : > { %v2918_v29 = vpop.eup %2220  ;;  %v1061_v30 = vsel %vm850_vm2, %v2916_v28, 0.0 }
 0x292   : > { %v916_v31 = vsel %vm850_vm2, %v2918_v29, 0.0  ;;  %1062 = vadd.xlane.f32.xlu0 %v1061_v30 }
 0x293   : > { %917 = vadd.xlane.f32.xlu1 %v916_v31 }
 0x294   : > { %v909_v32 = vpop.xlane.xlu0 %908 }
 0x295   : > { %v911_v33 = vsub.f32 %v903_v58, %v909_v32 }
 0x296   : > { %v1054_v34 = vpop.xlane.xlu2 %1053 }
 0x297   : > { %v914_v35 = vmul.f32 1.442695, %v911_v33  ;;  %v1056_v36 = vsub.f32 %v1048_v60, %v1054_v34 }
 0x299   : > { %2222 = vpow2.f32 %v914_v35  ;;  %v1059_v37 = vmul.f32 1.442695, %v1056_v36 }
 0x29b   : > { %2224 = vpow2.f32 %v1059_v37 }
 0x29d   : > { %v1123_v6 = vpop.permute.xlu1 %1122 }
 0x29e   : > { %v957_v38 = vpop.permute.xlu2 %956 }
 0x29f   : > { %v2924_v39 = vpop.eup %2222  ;;  %v963_v40 = vsel %vm961_vm3, %v957_v38, 0  ;;  %v1128_v38 = vsel %vm961_vm3, %v1123_v6, 0 }
 0x2a0   : > { %972 = vmatpush.bf16.msra.mxu3 %v963_v40  ;;  %v919_v41 = vsel %vm850_vm2, %v2924_v39, 0.0 }
 0x2a1   : > { %920 = vadd.xlane.f32.xlu1 %v919_v41  ;;  %v2929_v42 = vpop.eup %2224 }
 0x2a2   : > { %v1064_v43 = vsel %vm850_vm2, %v2929_v42, 0.0 }
 0x2a6   : > { %v1198_v44 = vpop.xlane.xlu0 %1197 }
 0x2a7   : > { %v1200_v54 = vsub.f32 %v2905_v7, %v1198_v44 }
 0x2a9   : > { %1065 = vadd.xlane.f32.xlu1 %v1064_v43  ;;  %v1203_v56 = vmul.f32 1.442695, %v1200_v54 }
 0x2b6   : > { %v1342_v45 = vpop.xlane.xlu0 %1341 }
 0x2b7   : > { %v1344_v46 = vsub.f32 %v1336_v14, %v1342_v45 }
 0x2b9   : > { %v1347_v47 = vmul.f32 1.442695, %v1344_v46 }
 0x2bb   : > { %2226 = vpow2.f32 %v1347_v47 }
 0x2c1   : > { %v2933_v48 = vpop.eup %2226 }
 0x2c2   : > { %v1352_v49 = vsel %vm850_vm2, %v2933_v48, 0.0 }
 0x2c3   : > { %1353 = vadd.xlane.f32.xlu2 %v1352_v49 }
 0x2c9   : > { %v979_v50 = vpop.permute.xlu0 %978 }
 0x2ca   : > { %v984_v51 = vsel %vm961_vm3, %v979_v50, 0 }
 0x2cb   : > { %993 = vmatpush.bf16.msrb.mxu3 %v984_v51 }
 0x2d7   : > { %v1195_v52 = vpop.xlane.xlu2 %1194 }
 0x2d8   : > { %v1199_v53 = vsub.f32 %v2901_v61, %v1195_v52 }
 0x2da   : > { %v1201_v55 = vmul.f32 1.442695, %v1199_v53 }
 0x2dc   : > { %2228 = vpow2.f32 %v1201_v55 }
 0x2dd   : > { %2230 = vpow2.f32 %v1203_v56 }
 0x2df   : > { %v1339_v57 = vpop.xlane.xlu2 %1338 }
 0x2e0   : > { %v1343_v58 = vsub.f32 %v1335_v20, %v1339_v57 }
 0x2e2   : > { %v2940_v59 = vpop.eup %2228  ;;  %v1345_v60 = vmul.f32 1.442695, %v1343_v58 }
 0x2e3   : > { %v1205_v62 = vsel %vm850_vm2, %v2940_v59, 0.0  ;;  %v2944_v0 = vpop.eup %2230 }
 0x2e4   : > { %2232 = vpow2.f32 %v1345_v60  ;;  %1206 = vadd.xlane.f32.xlu1 %v1205_v62  ;;  %v1208_v3 = vsel %vm850_vm2, %v2944_v0, 0.0 }
 0x2e7   : > { %v1102_v63 = vpop.permute.xlu2 %1101 }
 0x2e8   : > { %v1107_v61 = vsel %vm961_vm3, %v1102_v63, 0 }
 0x2e9   : > { %1116 = vmatpush.bf16.msrb.mxu2 %v1107_v61 }
 0x2ea   : > { %v2947_v1 = vpop.eup %2232 }
 0x2eb   : > { %v1349_v2 = vsel %vm850_vm2, %v2947_v1, 0.0 }
 0x2ec   : > { %1350 = vadd.xlane.f32.xlu0 %v1349_v2  ;;  %1209 = vadd.xlane.f32.xlu1 %v1208_v3 }
 0x300   : > { %1410 = vrot.lane.b32.xlu0 %v2863_v17, %s2539_s16 }
 0x305   : > { %1245 = vrot.lane.b32.xlu1 %v2858_v12, %s2540_s7  ;;  %v1063_v7 = vpop.xlane.xlu0 %1062 }
 0x306   : > { %v918_v8 = vpop.xlane.xlu1 %917  ;;  %2234 = vrcp.f32 %v1063_v7  ;;  %v1078_v19 = vand.u32 2147483648, %v1063_v7  ;;  %v1076_v21 = vand.u32 2147483647, %v1063_v7  ;;  %vm1072_vm6 = vweird.f32 %v1063_v7 }
 0x307   : > { %2236 = vrcp.f32 %v918_v8  ;;  %v933_v16 = vand.u32 2147483648, %v918_v8  ;;  %v931_v22 = vand.u32 2147483647, %v918_v8  ;;  %vm927_vm7 = vweird.f32 %v918_v8 }
 0x308   : > { %vm1077_vm10 = vcmp.eq.f32.partialorder %v1076_v21, 8.507059e+37 }
 0x309   : > { %v934_v26 = vor.u32 1.1754944e-38, %v933_v16  ;;  %vm932_vm11 = vcmp.eq.f32.partialorder %v931_v22, 8.507059e+37 }
 0x30c   : > { %v2235_v9 = vpop.eup %2234 }
 0x30d   : > { %v2237_v10 = vpop.eup %2236  ;;  %v1068_v11 = vmul.f32 %v2235_v9, %v1063_v7  ;;  %1266 = vrot.lane.b32.xlu1 %v2863_v17, %s2540_s7  ;;  %vm1073_vm4 = vweird.f32 %v2235_v9  ;;  %v1079_v17 = vor.u32 1.1754944e-38, %v1078_v19 }
 0x30e   : > { %v923_v13 = vmul.f32 %v2237_v10, %v918_v8  ;;  %vm928_vm5 = vweird.f32 %v2237_v10  ;;  %vm1074_vm8 = vmor %vm1072_vm6, %vm1073_vm4 }
 0x30f   : > { %v1069_v14 = vsub.f32 1.0, %v1068_v11  ;;  %vm929_vm9 = vmor %vm927_vm7, %vm928_vm5 }
 0x310   : > { %v924_v15 = vsub.f32 1.0, %v923_v13 }
 0x311   : > { %v1070_v18 = vmul.f32 %v2235_v9, %v1069_v14 }
 0x312   : > { %v925_v20 = vmul.f32 %v2237_v10, %v924_v15 }
 0x313   : > { %v1071_v23 = vadd.f32 %v2235_v9, %v1070_v18 }
 0x314   : > { %v921_v24 = vpop.xlane.xlu1 %920  ;;  %v926_v25 = vadd.f32 %v2237_v10, %v925_v20 }
 0x315   : > { %2238 = vrcp.f32 %v921_v24  ;;  %1389 = vrot.lane.b32.xlu1 %v2858_v12, %s2539_s16  ;;  %v1075_v30 = vsel %vm1074_vm8, %v2235_v9, %v1071_v23  ;;  %v948_v43 = vand.u32 2147483648, %v921_v24  ;;  %vm942_vm13 = vweird.f32 %v921_v24 }
 0x316   : > { %v930_v27 = vsel %vm929_vm9, %v2237_v10, %v926_v25  ;;  %v1080_v32 = vsel %vm1077_vm10, %v1079_v17, %v1075_v30 }
 0x317   : > { %v935_v31 = vsel %vm932_vm11, %v934_v26, %v930_v27  ;;  %v1097_v34 = vmul.f32 %v2916_v28, %v1080_v32  ;;  %v949_v46 = vor.u32 1.1754944e-38, %v948_v43 }
 0x318   : > { %v952_v33 = vmul.f32 %v2918_v29, %v935_v31  ;;  %v946_v29 = vand.u32 2147483647, %v921_v24 }
 0x319   : > { %v1099_v36 = vpack.c.bf16 %v1097_v34, %v1097_v34 }
 0x31a   : > { %v954_v35 = vpack.c.bf16 %v952_v33, %v952_v33  ;;  %vm947_vm15 = vcmp.eq.f32.partialorder %v946_v29, 8.507059e+37 }
 0x31b   : > { %v2239_v37 = vpop.eup %2238  ;;  %2029 = vmatmul.msk.bf16.vlgmr.msrb.gmra.mxu2 %vm850_vm2, %v1099_v36 }
 0x31c   : > { %v938_v40 = vmul.f32 %v2239_v37, %v921_v24  ;;  %2025 = vmatmul.msk.bf16.vlgmr.msra.gmra.mxu3 %vm850_vm2, %v954_v35  ;;  %v1066_v41 = vpop.xlane.xlu1 %1065  ;;  %vm943_vm12 = vweird.f32 %v2239_v37 }
 0x31d   : > { %2240 = vrcp.f32 %v1066_v41  ;;  %1137 = vmatpush.bf16.msra.mxu3 %v1128_v38  ;;  %vm944_vm14 = vmor %vm942_vm13, %vm943_vm12  ;;  %v1093_v56 = vand.u32 2147483648, %v1066_v41  ;;  %vm1087_vm4 = vweird.f32 %v1066_v41  ;;  %v1091_v57 = vand.u32 2147483647, %v1066_v41 }
 0x31e   : > { %v939_v12 = vsub.f32 1.0, %v938_v40 }
 0x31f   : > { %v1094_v60 = vor.u32 1.1754944e-38, %v1093_v56  ;;  %vm1092_vm6 = vcmp.eq.f32.partialorder %v1091_v57, 8.507059e+37 }
 0x320   : > { %v940_v44 = vmul.f32 %v2239_v37, %v939_v12 }
 0x322   : > { %v941_v45 = vadd.f32 %v2239_v37, %v940_v44 }
 0x323   : > { %v2241_v28 = vpop.eup %2240 }
 0x324   : > { %v1083_v47 = vmul.f32 %v2241_v28, %v1066_v41  ;;  %v945_v49 = vsel %vm944_vm14, %v2239_v37, %v941_v45  ;;  %vm1088_vm0 = vweird.f32 %v2241_v28 }
 0x325   : > { %v950_v50 = vsel %vm947_vm15, %v949_v46, %v945_v49  ;;  %vm1089_vm5 = vmor %vm1087_vm4, %vm1088_vm0 }
 0x326   : > { %v1084_v51 = vsub.f32 1.0, %v1083_v47  ;;  %v953_v52 = vmul.f32 %v2924_v39, %v950_v50 }
 0x328   : > { %v1085_v53 = vmul.f32 %v2241_v28, %v1084_v51  ;;  %v955_v54 = vpack.c.bf16 %v953_v52, %v953_v52 }
 0x32a   : > { %v1086_v55 = vadd.f32 %v2241_v28, %v1085_v53 }
 0x32c   : > { %2026 = vmatmul.msk.bf16.vlgmr.msrb.gmra.mxu3 %vm850_vm2, %v955_v54  ;;  %v1090_v58 = vsel %vm1089_vm5, %v2241_v28, %v1086_v55 }
 0x32d   : > { %v1095_v62 = vsel %vm1092_vm6, %v1094_v60, %v1090_v58 }
 0x32e   : > { %v1098_v63 = vmul.f32 %v2929_v42, %v1095_v62 }
 0x330   : > { %v1100_v61 = vpack.c.bf16 %v1098_v63, %v1098_v63 }
 0x336   : > { %v2968_v13 = vpop.xlane.xlu2 %1353 }
 0x337   : > { %v1379_v53 = vand.u32 2147483647, %v2968_v13 }
 0x33c   : > { %2030 = vmatmul.msk.bf16.vlgmr.msra.gmra.mxu3 %vm850_vm2, %v1100_v61 }
 0x357   : > { %v1207_v39 = vpop.xlane.xlu1 %1206 }
 0x358   : > { %2242 = vrcp.f32 %v1207_v39  ;;  %v1222_v16 = vand.u32 2147483648, %v1207_v39  ;;  %vm1216_vm8 = vweird.f32 %v1207_v39  ;;  %v1220_v18 = vand.u32 2147483647, %v1207_v39 }
 0x35a   : > { %v1223_v22 = vor.u32 1.1754944e-38, %v1222_v16  ;;  %vm1221_vm10 = vcmp.eq.f32.partialorder %v1220_v18, 8.507059e+37 }
 0x35e   : > { %v2243_v2 = vpop.eup %2242 }
 0x35f   : > { %v1210_v3 = vpop.xlane.xlu1 %1209  ;;  %v1212_v6 = vmul.f32 %v2243_v2, %v1207_v39  ;;  %v1351_v8 = vpop.xlane.xlu0 %1350  ;;  %vm1217_vm7 = vweird.f32 %v2243_v2 }
 0x360   : > { %2244 = vrcp.f32 %v1210_v3  ;;  %vm1218_vm9 = vmor %vm1216_vm8, %vm1217_vm7  ;;  %v1237_v17 = vand.u32 2147483648, %v1210_v3  ;;  %vm1231_vm12 = vweird.f32 %v1210_v3  ;;  %v1235_v30 = vand.u32 2147483647, %v1210_v3 }
 0x361   : > { %v1213_v7 = vsub.f32 1.0, %v1212_v6  ;;  %2246 = vrcp.f32 %v1351_v8  ;;  %vm1360_vm0 = vweird.f32 %v1351_v8  ;;  %v1364_v43 = vand.u32 2147483647, %v1351_v8 }
 0x362   : > { %2248 = vrcp.f32 %v2968_v13  ;;  %v1238_v36 = vor.u32 1.1754944e-38, %v1237_v17  ;;  %vm1236_vm14 = vcmp.eq.f32.partialorder %v1235_v30, 8.507059e+37  ;;  %vm1375_vm7 = vweird.f32 %v2968_v13 }
 0x363   : > { %v1214_v10 = vmul.f32 %v2243_v2, %v1213_v7  ;;  %vm1365_vm5 = vcmp.eq.f32.partialorder %v1364_v43, 8.507059e+37 }
 0x365   : > { %v1215_v14 = vadd.f32 %v2243_v2, %v1214_v10 }
 0x366   : > { %v2245_v9 = vpop.eup %2244 }
 0x367   : > { %v1227_v11 = vmul.f32 %v2245_v9, %v1210_v3  ;;  %v2247_v15 = vpop.eup %2246  ;;  %v1219_v19 = vsel %vm1218_vm9, %v2243_v2, %v1215_v14  ;;  %vm1232_vm11 = vweird.f32 %v2245_v9  ;;  %vm1380_vm9 = vcmp.eq.f32.partialorder %v1379_v53, 8.507059e+37 }
 0x368   : > { %v1356_v21 = vmul.f32 %v2247_v15, %v1351_v8  ;;  %v1224_v23 = vsel %vm1221_vm10, %v1223_v22, %v1219_v19  ;;  %v2249_v26 = vpop.eup %2248  ;;  %vm1233_vm13 = vmor %vm1231_vm12, %vm1232_vm11  ;;  %vm1361_vm15 = vweird.f32 %v2247_v15  ;;  %v2085_v22 = vld [vmem:[%s2824_s18] sm:$0xff]  ;;  %vm1460_vm10 = vcmask 195584  }
 0x369   : > { %v1228_v42 = vsub.f32 1.0, %v1227_v11  ;;  %v1241_v27 = vmul.f32 %v2940_v59, %v1224_v23  ;;  %v1371_v32 = vmul.f32 %v2249_v26, %v2968_v13  ;;  %v1366_v59 = vand.u32 2147483648, %v1351_v8  ;;  %vm1362_vm4 = vmor %vm1360_vm0, %vm1361_vm15 }
 0x36a   : > { %v1357_v25 = vsub.f32 1.0, %v1356_v21  ;;  %vm1376_vm6 = vweird.f32 %v2249_v26  ;;  %v2086_v21 = vld [vmem:[%s2824_s18 + $0x8] sm:$0xff] }
 0x36b   : > { %v1229_v20 = vmul.f32 %v2245_v9, %v1228_v42  ;;  %v1243_v37 = vpack.c.bf16 %v1241_v27, %v1241_v27  ;;  %v1372_v40 = vsub.f32 1.0, %v1371_v32  ;;  %v1367_v47 = vor.u32 1.1754944e-38, %v1366_v59  ;;  %vm1377_vm8 = vmor %vm1375_vm7, %vm1376_vm6  ;;  %1493 = vmatpush.bf16.msra.mxu0 %v2086_v21  ;;  %v2212_v21 = vld [vmem:[%s776_s11] ss:$0 sm:$0xff]  ;;  %s3133_s11 = scalar_lea.vmem [#allocation8], %s2791_s30 }
 0x36c   : > { %v1358_v34 = vmul.f32 %v2247_v15, %v1357_v25 }
 0x36d   : > { %v1230_v24 = vadd.f32 %v2245_v9, %v1229_v20  ;;  %v1373_v45 = vmul.f32 %v2249_v26, %v1372_v40 }
 0x36e   : > { %v1359_v41 = vadd.f32 %v2247_v15, %v1358_v34 }
 0x36f   : > { %v1234_v33 = vsel %vm1233_vm13, %v2245_v9, %v1230_v24  ;;  %v1374_v52 = vadd.f32 %v2249_v26, %v1373_v45  ;;  %1494 = vmatpush.bf16.msra.mxu0 %v2085_v22 }
 0x370   : > { %v1239_v38 = vsel %vm1236_vm14, %v1238_v36, %v1234_v33  ;;  %v1363_v28 = vsel %vm1362_vm4, %v2247_v15, %v1359_v41  ;;  %v2211_v41 = vld [vmem:[%s773_s21] ss:$0 sm:$0xff]  ;;  %vm1643_vm4 = vcmask 523264  }
 0x371   : > { %v1242_v12 = vmul.f32 %v2944_v0, %v1239_v38  ;;  %v1368_v51 = vsel %vm1365_vm5, %v1367_v47, %v1363_v28  ;;  %v1381_v0 = vand.u32 2147483648, %v2968_v13  ;;  %v1378_v56 = vsel %vm1377_vm8, %v2249_v26, %v1374_v52 }
 0x372   : > { %v1411_v44 = vpop.permute.xlu0 %1410  ;;  %v1385_v54 = vmul.f32 %v2947_v1, %v1368_v51  ;;  %v2544_v47 = vmov 32.0  }
 0x373   : > { %v1416_v49 = vsel %vm961_vm3, %v1411_v44, 0  ;;  %v1244_v50 = vpack.c.bf16 %v1242_v12, %v1242_v12  ;;  %v1382_v58 = vor.u32 1.1754944e-38, %v1381_v0  ;;  %2250 = vrcp.f32 %v2544_v47 }
 0x374   : > { %v1387_v60 = vpack.c.bf16 %v1385_v54, %v1385_v54 }
 0x375   : > { %v1383_v62 = vsel %vm1380_vm9, %v1382_v58, %v1378_v56 }
 0x376   : > { %v1386_v63 = vmul.f32 %v2933_v48, %v1383_v62 }
 0x377   : > { %v1246_v31 = vpop.permute.xlu1 %1245 }
 0x378   : > { %v1251_v35 = vsel %vm961_vm3, %v1246_v31, 0  ;;  %v1388_v61 = vpack.c.bf16 %v1386_v63, %v1386_v63 }
 0x379   : > { %1260 = vmatpush.bf16.msra.mxu2 %v1251_v35 }
 0x37c   : > { %2033 = vmatmul.msk.bf16.vlgmr.msra.gmra.mxu2 %vm850_vm2, %v1243_v37 }
 0x37f   : > { %v1267_v29 = vpop.permute.xlu1 %1266 }
 0x380   : > { %v1272_v46 = vsel %vm961_vm3, %v1267_v29, 0 }
 0x381   : > { %1281 = vmatpush.bf16.msrb.mxu3 %v1272_v46 }
 0x384   : > { %2034 = vmatmul.msk.bf16.vlgmr.msrb.gmra.mxu3 %vm850_vm2, %v1244_v50 }
 0x385   : > { %1425 = vmatpush.bf16.msra.mxu3 %v1416_v49  ;;  %v2251_v49 = vpop.eup %2250 }
 0x386   : > { %v1512_v50 = vmul.f32 32.0, %v2251_v49 }
 0x387   : > { %v1390_v55 = vpop.permute.xlu1 %1389 }
 0x388   : > { %v1395_v57 = vsel %vm961_vm3, %v1390_v55, 0  ;;  %vm1457_vm3 = vcmask 130048   ;;  %v1513_v51 = vsub.f32 1.0, %v1512_v50 }
 0x389   : > { %1404 = vmatpush.bf16.msrb.mxu2 %v1395_v57 }
 0x38a   : > { %v1514_v52 = vmul.f32 %v2251_v49, %v1513_v51 }
 0x38c   : > { %2037 = vmatmul.msk.bf16.vlgmr.msrb.gmra.mxu2 %vm850_vm2, %v1387_v60  ;;  %v1515_v0 = vadd.f32 %v2251_v49, %v1514_v52 }
 0x394   : > { %2038 = vmatmul.msk.bf16.vlgmr.msra.gmra.mxu3 %vm850_vm2, %v1388_v61 }
 0x39e   : > { %v1118_v2 = vpop.f32.mrf.mxu2 }
 0x39f   : > { %v974_v39 = vpop.f32.mrf.mxu3 }
 0x3a6   : > { %v1120_v3 = vpop.f32.mrf.mxu2 }
 0x3a7   : > { %v976_v1 = vpop.f32.mrf.mxu3  ;;  %v2087_v3 = vld [vmem:[%s2837_s12] sm:$0xff] }
 0x3af   : > { %v995_v6 = vpop.f32.mrf.mxu3 }
 0x3b7   : > { %v997_v7 = vpop.f32.mrf.mxu3 }
 0x3bf   : > { %v1139_v8 = vpop.f32.mrf.mxu3 }
 0x3c0   : > { %v2193_v9 = vpack.i.bf16 %v1139_v8, %v1118_v2 }
 0x3c2   : > { %2194 = vrot.lane.b32.xlu2 %v2193_v9, %s2541_s2 }
 0x3c7   : > { %v1141_v10 = vpop.f32.mrf.mxu3 }
 0x3ff   : > { %v1262_v11 = vpop.f32.mrf.mxu2 }
 0x407   : > { %v1264_v13 = vpop.f32.mrf.mxu2  ;;  %v1283_v48 = vpop.f32.mrf.mxu3 }
 0x408   : > { %v2198_v14 = vpack.i.bf16 %v1283_v48, %v1262_v11 }
 0x40a   : > { %2199 = vrot.lane.b32.xlu1 %v2198_v14, %s2542_s3 }
 0x40f   : > { %v1285_v42 = vpop.f32.mrf.mxu3  ;;  %v1406_v15 = vpop.f32.mrf.mxu2 }
 0x417   : > { %v1408_v16 = vpop.f32.mrf.mxu2  ;;  %v1427_v18 = vpop.f32.mrf.mxu3 }
 0x418   : > { %v2203_v19 = vpack.i.bf16 %v1427_v18, %v1406_v15 }
 0x41a   : > { %2204 = vrot.lane.b32.xlu1 %v2203_v19, %s2543_s4 }
 0x41c   : > { %v2195_v24 = vpop.permute.xlu2 %2194 }
 0x41d   : > { %v2197_v25 = vunpack.i.h.bf16 %v2195_v24  ;;  %v2196_v26 = vunpack.i.l.bf16 %v2195_v24 }
 0x41f   : > { %v1429_v20 = vpop.f32.mrf.mxu3  ;;  %v1456_v31 = vsel %vm850_vm2, %v995_v6, %v2197_v25  ;;  %v1455_v32 = vsel %vm850_vm2, %v974_v39, %v2196_v26  ;;  %vm1516_vm2 = vweird.f32 %v2251_v49  ;;  %v2088_v39 = vld [vmem:[%s2837_s12 + $0x8] sm:$0xff]  ;;  %v2213_v25 = vld [vmem:[%s3132_s28] ss:$0 sm:$0xff] }
 0x420   : > { %1596 = vmatpush.bf16.msra.mxu1 %v2088_v39 }
 0x424   : > { %1597 = vmatpush.bf16.msra.mxu1 %v2087_v3 }
 0x47c   : > { %v2200_v23 = vpop.permute.xlu1 %2199 }
 0x47d   : > { %v2202_v17 = vunpack.i.h.bf16 %v2200_v23  ;;  %v2201_v27 = vunpack.i.l.bf16 %v2200_v23 }
 0x47f   : > { %v1459_v35 = vsel %vm1457_vm3, %v1456_v31, %v2202_v17  ;;  %v1458_v36 = vsel %vm1457_vm3, %v1455_v32, %v2201_v27 }
 0x48c   : > { %v2205_v30 = vpop.permute.xlu1 %2204 }
 0x48d   : > { %v2207_v33 = vunpack.i.h.bf16 %v2205_v30  ;;  %v2206_v34 = vunpack.i.l.bf16 %v2205_v30 }
 0x48f   : > { %v1462_v37 = vsel %vm1460_vm10, %v1459_v35, %v2207_v33  ;;  %v1461_v38 = vsel %vm1460_vm10, %v1458_v36, %v2206_v34  ;;  %v2092_v33 = vld [vmem:[%s2843_s29 + $0x18] sm:$0xff]  ;;  %v2091_v34 = vld [vmem:[%s2843_s29 + $0x10] sm:$0xff]  ;;  %v2090_v35 = vld [vmem:[%s2843_s29 + $0x8] sm:$0xff] }
 0x490   : > { %v1463_v40 = vpack.c.bf16 %v1462_v37, %v1461_v38  ;;  %1651 = vmatpush.bf16.msra.mxu2 %v2092_v33  ;;  %v2089_v36 = vld [vmem:[%s2843_s29] sm:$0xff] }
 0x491   : > { %v2214_v38 = vld [vmem:[%s3133_s11] ss:$0 sm:$0xff] }
 0x492   : > { %2047 = vmatmul.msk.bf16.vlgmr.msra.gmra.mxu0 %vm823_vm1, %v1463_v40 }
 0x494   : > { %1652 = vmatpush.bf16.msra.mxu2 %v2091_v34 }
 0x498   : > { %1653 = vmatpush.bf16.msra.mxu2 %v2090_v35 }
 0x49c   : > { %1654 = vmatpush.bf16.msra.mxu2 %v2089_v36 }
 0x50f   : > { %v1496_v59 = vpop.f32.mrf.mxu0 }
 0x510   : > { %v1497_v12 = vadd.f32 %v2211_v41, %v1496_v59 }
 0x512   : > { %v1501_v43 = vadd.f32 %v1497_v12, %v2851_v4  ;;  %v3002_v4 = vsel %vm1516_vm2, %v2251_v49, %v1515_v0 }
 0x514   : > { %v1505_v44 = vsel %vm823_vm1, %v1501_v43, 0.0 }
 0x515   : > { %1506 = vadd.xlane.f32.xlu1 %v1505_v44 }
 0x517   : > { %v1498_v29 = vpop.f32.mrf.mxu0 }
 0x518   : > { %v1499_v45 = vadd.f32 %v2211_v41, %v1498_v29  ;;  %v2215_v29 = vld [vmem:[%s3134_s19] ss:$0 sm:$0xff] }
 0x51a   : > { %v1502_v28 = vadd.f32 %v1499_v45, %v2853_v5 }
 0x51c   : > { %v1508_v46 = vsel %vm823_vm1, %v1502_v28, 0.0 }
 0x51d   : > { %1509 = vadd.xlane.f32.xlu0 %v1508_v46 }
 0x588   : > { %v1507_v53 = vpop.xlane.xlu1 %1506 }
 0x589   : > { %v1518_v54 = vmul.f32 %v3002_v4, %v1507_v53 }
 0x58b   : > { %v1520_v55 = vsub.f32 %v1501_v43, %v1518_v54 }
 0x58d   : > { %v1522_v5 = vmul.f32 %v1520_v55, %v1520_v55 }
 0x58f   : > { %v1524_v56 = vsel %vm823_vm1, %v1522_v5, 0.0 }
 0x590   : > { %v1510_v57 = vpop.xlane.xlu0 %1509  ;;  %1525 = vadd.xlane.f32.xlu2 %v1524_v56 }
 0x591   : > { %v1519_v58 = vmul.f32 %v3002_v4, %v1510_v57 }
 0x593   : > { %v1521_v60 = vsub.f32 %v1502_v28, %v1519_v58 }
 0x595   : > { %v1523_v62 = vmul.f32 %v1521_v60, %v1521_v60 }
 0x597   : > { %v1527_v63 = vsel %vm823_vm1, %v1523_v62, 0.0 }
 0x598   : > { %1528 = vadd.xlane.f32.xlu1 %v1527_v63 }
 0x603   : > { %v1526_v61 = vpop.xlane.xlu2 %1525 }
 0x604   : > { %v1530_v2 = vmul.f32 %v1526_v61, %v3002_v4 }
 0x606   : > { %v1532_v1 = vadd.f32 1e-05, %v1530_v2 }
 0x608   : > { %2252 = vrsqrt.f32 %v1532_v1  ;;  %vm1540_vm12 = vweird.f32 %v1532_v1 }
 0x60b   : > { %v1529_v6 = vpop.xlane.xlu1 %1528 }
 0x60c   : > { %v1531_v7 = vmul.f32 %v1529_v6, %v3002_v4 }
 0x60e   : > { %v2253_v8 = vpop.eup %2252  ;;  %v1533_v9 = vadd.f32 1e-05, %v1531_v7 }
 0x60f   : > { %v1535_v10 = vmul.f32 %v2253_v8, %v1532_v1  ;;  %vm1541_vm11 = vweird.f32 %v2253_v8 }
 0x610   : > { %2254 = vrsqrt.f32 %v1533_v9  ;;  %vm1542_vm13 = vmor %vm1540_vm12, %vm1541_vm11  ;;  %vm1550_vm15 = vweird.f32 %v1533_v9 }
 0x611   : > { %v1536_v11 = vmul.f32 %v2253_v8, %v1535_v10 }
 0x613   : > { %v1537_v13 = vmul.f32 0.5, %v1536_v11 }
 0x615   : > { %v1538_v48 = vsub.f32 1.5, %v1537_v13 }
 0x616   : > { %v2255_v14 = vpop.eup %2254 }
 0x617   : > { %v1539_v42 = vmul.f32 %v2253_v8, %v1538_v48  ;;  %v1545_v15 = vmul.f32 %v2255_v14, %v1533_v9  ;;  %vm1551_vm14 = vweird.f32 %v2255_v14 }
 0x618   : > { %vm1552_vm0 = vmor %vm1550_vm15, %vm1551_vm14 }
 0x619   : > { %v1546_v16 = vmul.f32 %v2255_v14, %v1545_v15  ;;  %v1543_v18 = vsel %vm1542_vm13, %v2253_v8, %v1539_v42 }
 0x61a   : > { %v1554_v22 = vmul.f32 %v1543_v18, %v1520_v55 }
 0x61b   : > { %v1547_v19 = vmul.f32 0.5, %v1546_v16  ;;  %v2217_v16 = vld [vmem:[%s3136_s24] ss:$0 sm:$0xff] }
 0x61c   : > { %v1559_v26 = vmul.f32 %v2212_v21, %v1554_v22 }
 0x61d   : > { %v1548_v20 = vsub.f32 1.5, %v1547_v19 }
 0x61e   : > { %v1564_v30 = vadd.f32 %v2213_v25, %v1559_v26 }
 0x61f   : > { %v1549_v23 = vmul.f32 %v2255_v14, %v1548_v20 }
 0x621   : > { %v1553_v24 = vsel %vm1552_vm0, %v2255_v14, %v1549_v23  ;;  %v2216_v14 = vld [vmem:[%s789_s6] ss:$0 sm:$0xff]  ;;  %s3137_s6 = sld [smem:[#allocation34_spill]] (!%p2074_p7) }
 0x622   : > { %v1555_v17 = vmul.f32 %v1553_v24, %v1521_v60 }
 0x624   : > { %v1560_v27 = vmul.f32 %v2212_v21, %v1555_v17 }
 0x626   : > { %v1565_v31 = vadd.f32 %v2213_v25, %v1560_v27 }
 0x628   : > { %v1566_v32 = vpack.c.bf16 %v1565_v31, %v1564_v30 }
 0x62a   : > { %2056 = vmatmul.msk.bf16.vlgmr.msra.gmra.mxu1 %vm823_vm1, %v1566_v32 }
 0x6a7   : > { %v1599_v37 = vpop.f32.mrf.mxu1 }
 0x6a8   : > { %v1600_v40 = vadd.f32 %v2214_v38, %v1599_v37 }
 0x6aa   : > { %v1604_v12 = vmax.f32 %v1600_v40, 0.0 }
 0x6af   : > { %v1601_v41 = vpop.f32.mrf.mxu1 }
 0x6b0   : > { %v1602_v59 = vadd.f32 %v2214_v38, %v1601_v41 }
 0x6b2   : > { %v1605_v43 = vmax.f32 %v1602_v59, 0.0 }
 0x6b4   : > { %v1606_v44 = vpack.c.bf16 %v1605_v43, %v1604_v12 }
 0x6b6   : > { %2073 = vmatmul.msk.bf16.vlgmr.msra.gmra.mxu2 %vm1643_vm4, %v1606_v44 }
 0x739   : > { %v1656_v45 = vpop.f32.mrf.mxu2 }
 0x73a   : > { %v1657_v28 = vadd.f32 %v2215_v29, %v1656_v45 }
 0x73c   : > { %v1661_v46 = vadd.f32 %v1657_v28, %v1564_v30 }
 0x73e   : > { %v1665_v47 = vsel %vm823_vm1, %v1661_v46, 0.0 }
 0x73f   : > { %1666 = vadd.xlane.f32.xlu0 %v1665_v47 }
 0x741   : > { %v1658_v49 = vpop.f32.mrf.mxu2 }
 0x742   : > { %v1659_v50 = vadd.f32 %v2215_v29, %v1658_v49 }
 0x744   : > { %v1662_v51 = vadd.f32 %v1659_v50, %v1565_v31 }
 0x746   : > { %v1668_v52 = vsel %vm823_vm1, %v1662_v51, 0.0 }
 0x747   : > { %1669 = vadd.xlane.f32.xlu2 %v1668_v52 }
 0x7b2   : > { %v1667_v0 = vpop.xlane.xlu0 %1666 }
 0x7b3   : > { %v1671_v53 = vmul.f32 %v1667_v0, %v3002_v4 }
 0x7b5   : > { %v1673_v54 = vsub.f32 %v1661_v46, %v1671_v53 }
 0x7b7   : > { %v1675_v55 = vmul.f32 %v1673_v54, %v1673_v54 }
 0x7b9   : > { %v1677_v5 = vsel %vm823_vm1, %v1675_v55, 0.0 }
 0x7ba   : > { %v1670_v56 = vpop.xlane.xlu2 %1669  ;;  %1678 = vadd.xlane.f32.xlu1 %v1677_v5 }
 0x7bb   : > { %v1672_v57 = vmul.f32 %v1670_v56, %v3002_v4 }
 0x7bd   : > { %v1674_v58 = vsub.f32 %v1662_v51, %v1672_v57 }
 0x7bf   : > { %v1676_v60 = vmul.f32 %v1674_v58, %v1674_v58 }
 0x7c1   : > { %v1680_v62 = vsel %vm823_vm1, %v1676_v60, 0.0 }
 0x7c2   : > { %1681 = vadd.xlane.f32.xlu0 %v1680_v62 }
 0x82d   : > { %v1679_v63 = vpop.xlane.xlu1 %1678 }
 0x82e   : > { %v1683_v61 = vmul.f32 %v1679_v63, %v3002_v4 }
 0x830   : > { %v1685_v39 = vadd.f32 1e-05, %v1683_v61 }
 0x832   : > { %2256 = vrsqrt.f32 %v1685_v39  ;;  %vm1693_vm6 = vweird.f32 %v1685_v39 }
 0x835   : > { %v1682_v2 = vpop.xlane.xlu0 %1681 }
 0x836   : > { %v1684_v1 = vmul.f32 %v1682_v2, %v3002_v4 }
 0x838   : > { %v2257_v3 = vpop.eup %2256  ;;  %v1686_v6 = vadd.f32 1e-05, %v1684_v1 }
 0x839   : > { %v1688_v7 = vmul.f32 %v2257_v3, %v1685_v39  ;;  %vm1694_vm5 = vweird.f32 %v2257_v3 }
 0x83a   : > { %2258 = vrsqrt.f32 %v1686_v6  ;;  %vm1695_vm7 = vmor %vm1693_vm6, %vm1694_vm5  ;;  %vm1703_vm9 = vweird.f32 %v1686_v6 }
 0x83b   : > { %v1689_v8 = vmul.f32 %v2257_v3, %v1688_v7 }
 0x83d   : > { %v1690_v9 = vmul.f32 0.5, %v1689_v8 }
 0x83f   : > { %v1691_v10 = vsub.f32 1.5, %v1690_v9 }
 0x840   : > { %v2259_v11 = vpop.eup %2258 }
 0x841   : > { %v1692_v13 = vmul.f32 %v2257_v3, %v1691_v10  ;;  %v1698_v48 = vmul.f32 %v2259_v11, %v1686_v6  ;;  %vm1704_vm8 = vweird.f32 %v2259_v11 }
 0x842   : > { %vm1705_vm3 = vmor %vm1703_vm9, %vm1704_vm8 }
 0x843   : > { %v1696_v42 = vsel %vm1695_vm7, %v2257_v3, %v1692_v13  ;;  %v1699_v15 = vmul.f32 %v2259_v11, %v1698_v48 }
 0x844   : > { %v1707_v18 = vmul.f32 %v1696_v42, %v1673_v54 }
 0x845   : > { %v1700_v19 = vmul.f32 0.5, %v1699_v15 }
 0x846   : > { %v1712_v20 = vmul.f32 %v2216_v14, %v1707_v18 }
 0x847   : > { %v1701_v21 = vsub.f32 1.5, %v1700_v19 }
 0x848   : > { %v1717_v22 = vadd.f32 %v2217_v16, %v1712_v20 }
 0x849   : > { %v1702_v23 = vmul.f32 %v2259_v11, %v1701_v21 }
 0x84a   : > { %1719 = vst.msk [vmem:[#allocation2] sm:$0xff] %vm823_vm1, %v1717_v22 }
 0x84b   : > { %v1706_v24 = vsel %vm1705_vm3, %v2259_v11, %v1702_v23 }
 0x84c   : > { %v1708_v25 = vmul.f32 %v1706_v24, %v1674_v58 }
 0x84e   : > { %v1713_v26 = vmul.f32 %v2216_v14, %v1708_v25  ;;  %1724 = sbr.rel (%p2074_p7) target bundleno = 2408 (0x968), region = 116 }
 0x850   : > { %v1718_v17 = vadd.f32 %v2217_v16, %v1713_v26 }
 0x852   : > { %1720 = vst.msk [vmem:[#allocation2 + $0x8] sm:$0xff] %vm823_vm1, %v1718_v17 }
 0x853   : > { %v1727_v27 = vsel %vm823_vm1, %v1717_v22, 0.0  ;;  %v1730_v30 = vsel %vm823_vm1, %v1718_v17, 0.0  ;;  %v2260_v53 = vld [vmem:[%s3137_s6] ss:$0 sm:$0xff]  ;;  %v2261_v5 = vld [vmem:[#allocation12] ss:$0 sm:$0xff] }
 0x854   : > { %1728 = vadd.xlane.f32.xlu0 %v1727_v27 }
 0x85c   : > { %1731 = vadd.xlane.f32.xlu0 %v1730_v30 }
 0x8c7   : > { %v1729_v31 = vpop.xlane.xlu0 %1728 }
 0x8c8   : > { %v1733_v32 = vmul.f32 %v1729_v31, %v3002_v4 }
 0x8ca   : > { %v1735_v33 = vsub.f32 %v1717_v22, %v1733_v32 }
 0x8cc   : > { %v1737_v34 = vmul.f32 %v1735_v33, %v1735_v33 }
 0x8ce   : > { %v1739_v35 = vsel %vm823_vm1, %v1737_v34, 0.0 }
 0x8cf   : > { %1740 = vadd.xlane.f32.xlu1 %v1739_v35  ;;  %v1732_v36 = vpop.xlane.xlu0 %1731 }
 0x8d0   : > { %v1734_v37 = vmul.f32 %v1732_v36, %v3002_v4 }
 0x8d2   : > { %v1736_v38 = vsub.f32 %v1718_v17, %v1734_v37 }
 0x8d4   : > { %v1738_v40 = vmul.f32 %v1736_v38, %v1736_v38 }
 0x8d6   : > { %v1742_v41 = vsel %vm823_vm1, %v1738_v40, 0.0 }
 0x8d7   : > { %1743 = vadd.xlane.f32.xlu1 %v1742_v41 }
 0x942   : > { %v1741_v59 = vpop.xlane.xlu1 %1740 }
 0x943   : > { %v1745_v12 = vmul.f32 %v1741_v59, %v3002_v4 }
 0x945   : > { %v1747_v43 = vadd.f32 1e-05, %v1745_v12 }
 0x947   : > { %2262 = vrsqrt.f32 %v1747_v43  ;;  %vm1755_vm2 = vweird.f32 %v1747_v43 }
 0x94a   : > { %v1744_v44 = vpop.xlane.xlu1 %1743 }
 0x94b   : > { %v1746_v29 = vmul.f32 %v1744_v44, %v3002_v4 }
 0x94d   : > { %v2263_v45 = vpop.eup %2262  ;;  %v1748_v28 = vadd.f32 1e-05, %v1746_v29 }
 0x94e   : > { %v1750_v46 = vmul.f32 %v2263_v45, %v1747_v43  ;;  %vm1756_vm10 = vweird.f32 %v2263_v45 }
 0x94f   : > { %2264 = vrsqrt.f32 %v1748_v28  ;;  %vm1757_vm11 = vmor %vm1755_vm2, %vm1756_vm10  ;;  %vm1765_vm13 = vweird.f32 %v1748_v28 }
 0x950   : > { %v1751_v47 = vmul.f32 %v2263_v45, %v1750_v46 }
 0x952   : > { %v1752_v49 = vmul.f32 0.5, %v1751_v47 }
 0x954   : > { %v1753_v50 = vsub.f32 1.5, %v1752_v49 }
 0x955   : > { %v2265_v51 = vpop.eup %2264 }
 0x956   : > { %v1754_v52 = vmul.f32 %v2263_v45, %v1753_v50  ;;  %v1760_v0 = vmul.f32 %v2265_v51, %v1748_v28  ;;  %vm1766_vm12 = vweird.f32 %v2265_v51 }
 0x957   : > { %vm1767_vm14 = vmor %vm1765_vm13, %vm1766_vm12 }
 0x958   : > { %v1758_v54 = vsel %vm1757_vm11, %v2263_v45, %v1754_v52  ;;  %v1761_v55 = vmul.f32 %v2265_v51, %v1760_v0 }
 0x959   : > { %v1769_v4 = vmul.f32 %v1758_v54, %v1735_v33 }
 0x95a   : > { %v1762_v56 = vmul.f32 0.5, %v1761_v55 }
 0x95b   : > { %v1774_v57 = vmul.f32 %v2260_v53, %v1769_v4 }
 0x95c   : > { %v1763_v58 = vsub.f32 1.5, %v1762_v56 }
 0x95d   : > { %v1779_v60 = vadd.f32 %v2261_v5, %v1774_v57 }
 0x95e   : > { %v1764_v62 = vmul.f32 %v2265_v51, %v1763_v58 }
 0x95f   : > { %1781 = vst.msk [vmem:[#allocation14] sm:$0xff] %vm823_vm1, %v1779_v60 }
 0x960   : > { %v1768_v63 = vsel %vm1767_vm14, %v2265_v51, %v1764_v62 }
 0x961   : > { %v1770_v61 = vmul.f32 %v1768_v63, %v1736_v38 }
 0x963   : > { %v1775_v39 = vmul.f32 %v2260_v53, %v1770_v61 }
 0x965   : > { %v1780_v2 = vadd.f32 %v2261_v5, %v1775_v39 }
 0x967   : > { %1782 = vst.msk [vmem:[#allocation14 + $0x8] sm:$0xff] %vm823_vm1, %v1780_v2 }
 0x968 PF: > { %p2138_p10 = scmp.eq.s32.totalorder %s2721_s0, 1  ;;  %s2545_s14 = smov [#allocation14]  }
 0x969   : > { %s1788_s10 = sshll.u32 %s2545_s14, 4  ;;  %s3138_s16 = sld [smem:[#allocation35_spill]]  ;;  %s1789_s10 = int_to_ptr.vmem [resolvable:$true] %s1788_s10 }
 0x96a   : > { %s2546_s3 = smov 128  }
 0x96f   : > { %s1790_s7 = sshll.u32 %s3138_s16, 4  ;;  %s1791_s7 = int_to_ptr.hbm [resolvable:$true] %s1790_s7 }
 0x970   : > { %2110 = dma.vmem_to_hbm [thread:$0]  (%p2138_p10), %s1789_s10, 256, %s1791_s7, [#allocation5], %s2546_s3, %s2546_s3, %s2541_s2  }
 0x971   : > { %2507 = dma.done.wait (%p2138_p10), [#allocation5], 256  }
 0x972   : > { %2509 = vsyncadd (%p2138_p10), [#allocation5], 4294967040 }
 0x973 PF: > { %s3139_s24 = sld [smem:[#allocation21_spill]]  ;;  %s3142_s21 = smov %s2516_s22 }
 0x974   : > { %s3140_s4 = sld [smem:[#allocation20_spill]] }
 0x975   : > { %s3141_s23 = sld [smem:[#allocation22_spill]] }
 0x979   : > { %p32_p13 = scmp.ge.s32.totalorder %s3139_s24, 4  }
 0x97a   : > { %s3143_s22 = smov %s3140_s4 }
 0x97b   :  { %34 = sbr.rel (!%p32_p13) target bundleno = 22 (0x16), region = 197 }
 0x980   :  { %1807 = vsyncpa [#allocation4], 1 }
 0x981   :  { %1809 = vsyncpa [#allocation4 + $0x1], 1 }
 0x982   :  { %1810 = vsyncpa [#allocation7], 1 }
 0x983   :  { %1812 = vsyncpa [#allocation7 + $0x1], 1 }
 0x984   :  { %1813 = vsyncpa [#allocation10], 1 }
 0x985   :  { %1815 = vsyncpa [#allocation10 + $0x1], 1 }
 0x986   :  { %1816 = vsyncpa [#allocation13], 1 }
 0x987   :  { %1817 = vsyncpa [#allocation5], 1 }
 0x988   :  { %1819 = vsyncpa [#allocation5 + $0x1], 1 }

</bundles_post_ra>
